<compile_context>
chip_gen: v5e
topology: v5e:2x2
jax: 0.10.0
libtpu: 0.0.40
codegen_flags: <defaults>
</compile_context>

<pallas_src>
import functools

import jax
import jax.numpy as jnp
from jax.experimental import pallas as pl
from jax.experimental.pallas import tpu as pltpu


# -------------------- per-generation VMEM budget / tile targets ---------------

def _phys_vmem_bytes():
    try:
        return int(pltpu.get_tpu_info().vmem_capacity_bytes)
    except Exception:
        return 64 * 1024 * 1024      # assume v7x-sized VMEM if the query fails


_PHYS_VMEM = _phys_vmem_bytes()
# ~3/4 of physical: 96 MiB scoped on v5e/v6e (128 MiB phys), 48 MiB on v7x (64 MiB).
_VMEM_LIMIT = int(min(_PHYS_VMEM * 3 // 4, 96 * 1024 * 1024))
_BIG_VMEM = _PHYS_VMEM >= 96 * 1024 * 1024
_TM_TARGET = 512 if _BIG_VMEM else 256
_TK_TARGET = 512 if _BIG_VMEM else 256


def _pick_tile(dim, target, granularity):
    """Largest tile <= target that divides dim and respects TPU tiling granularity.

    Falls back to the full dimension (always a legal block) when no aligned
    divisor exists or when the dimension is already small.
    """
    if dim <= target:
        return dim
    t = (target // granularity) * granularity
    while t >= granularity:
        if dim % t == 0:
            return t
        t -= granularity
    return dim


def _gelu(y):
    # BERT GELU (tanh approximation; exact-erf GELU differs by <1e-3)
    c = 0.7978845608028654  # sqrt(2/pi)
    return 0.5 * y * (1.0 + jnp.tanh(c * (y + 0.044715 * y * y * y)))


# ------------------------- tiled fused linear kernels ------------------------

def _matmul_kernel(x_ref, w_ref, b_ref, o_ref, acc_ref, *, activation):
    @pl.when(pl.program_id(2) == 0)
    def _():
        acc_ref[...] = jnp.zeros_like(acc_ref)

    acc_ref[...] += jnp.dot(x_ref[...], w_ref[...],
                            preferred_element_type=jnp.float32)

    @pl.when(pl.program_id(2) == pl.num_programs(2) - 1)
    def _():
        y = acc_ref[...] + b_ref[...]          # epilogue stays in f32
        if activation == "gelu":
            y = _gelu(y)
        o_ref[...] = y.astype(o_ref.dtype)


def _matmul_ln_kernel(x_ref, w_ref, b_ref, res_ref, g_ref, beta_ref,
                      o_ref, acc_ref, *, eps):
    @pl.when(pl.program_id(2) == 0)
    def _():
        acc_ref[...] = jnp.zeros_like(acc_ref)

    acc_ref[...] += jnp.dot(x_ref[...], w_ref[...],
                            preferred_element_type=jnp.float32)

    @pl.when(pl.program_id(2) == pl.num_programs(2) - 1)
    def _():
        # fused residual add + LayerNorm epilogue (f32 math)
        y = acc_ref[...] + b_ref[...] + res_ref[...].astype(jnp.float32)
        mu = jnp.mean(y, axis=-1, keepdims=True)
        yc = y - mu
        var = jnp.mean(yc * yc, axis=-1, keepdims=True)
        out = yc * jax.lax.rsqrt(var + eps) * g_ref[...] + beta_ref[...]
        o_ref[...] = out.astype(o_ref.dtype)


def pallas_linear(x, w, b, *, activation=None,
                  ln_residual=None, ln_gamma=None, ln_beta=None, ln_eps=1e-12,
                  out_dtype=jnp.bfloat16,
                  tm_target=None, tn_target=512, tk_target=None):
    """y = x @ w + b with an optional GELU or residual-add+LayerNorm epilogue.

    x:(M,K) bf16, w:(K,N) bf16, b:(N,) f32.  Tiled over (M//tm, N//tn, K//tk)
    with a f32 VMEM accumulator; K is the innermost ("arbitrary") reduction
    axis, M/N tiles are "parallel" (megacore-shardable on v7x).
    """
    M, K = x.shape
    N = w.shape[1]
    fuse_ln = ln_residual is not None

    if tm_target is None:
        tm_target = _TM_TARGET
    if tk_target is None:
        tk_target = _TK_TARGET
    if fuse_ln and not _BIG_VMEM:
        # v7x VMEM audit: the LN epilogue keeps a (tm, N) f32 accumulator plus
        # residual + output tiles resident (tn = N) — cap tm under the 64 MiB budget.
        tm_target = min(tm_target, 256)

    tm = _pick_tile(M, tm_target, 16)       # 16 = bf16 sublane granularity
    tk = _pick_tile(K, tk_target, 128)
    # the LayerNorm epilogue needs the whole output row resident -> tn = N
    tn = N if fuse_ln else _pick_tile(N, tn_target, 128)

    grid = (M // tm, N // tn, K // tk)
    b2 = b.reshape(1, N).astype(jnp.float32)

    in_specs = [
        pl.BlockSpec((tm, tk), lambda i, j, k: (i, k)),
        pl.BlockSpec((tk, tn), lambda i, j, k: (k, j)),
        pl.BlockSpec((1, tn), lambda i, j, k: (0, j)),
    ]
    operands = [x, w, b2]

    if fuse_ln:
        kernel = functools.partial(_matmul_ln_kernel, eps=ln_eps)
        in_specs += [
            pl.BlockSpec((tm, tn), lambda i, j, k: (i, j)),   # residual (tn == N)
            pl.BlockSpec((1, tn), lambda i, j, k: (0, j)),    # gamma
            pl.BlockSpec((1, tn), lambda i, j, k: (0, j)),    # beta
        ]
        operands += [ln_residual,
                     ln_gamma.reshape(1, N).astype(jnp.float32),
                     ln_beta.reshape(1, N).astype(jnp.float32)]
    else:
        kernel = functools.partial(_matmul_kernel, activation=activation)

    return pl.pallas_call(
        kernel,
        out_shape=jax.ShapeDtypeStruct((M, N), out_dtype),
        grid=grid,
        in_specs=in_specs,
        out_specs=pl.BlockSpec((tm, tn), lambda i, j, k: (i, j)),
        scratch_shapes=[pltpu.VMEM((tm, tn), jnp.float32)],
        compiler_params=pltpu.CompilerParams(
            dimension_semantics=("parallel", "parallel", "arbitrary"),
            vmem_limit_bytes=_VMEM_LIMIT),
    )(*operands)


# ----------------------------- LayerNorm kernel ------------------------------

def _ln_kernel(x_ref, g_ref, b_ref, o_ref, *, eps):
    x = x_ref[...].astype(jnp.float32)
    mu = jnp.mean(x, axis=-1, keepdims=True)
    xc = x - mu
    var = jnp.mean(xc * xc, axis=-1, keepdims=True)
    o_ref[...] = (xc * jax.lax.rsqrt(var + eps) * g_ref[...] + b_ref[...]
                  ).astype(o_ref.dtype)


def pallas_layernorm(x, gamma, beta, eps=1e-12, out_dtype=jnp.bfloat16):
    """LayerNorm over the last dim (used for the embedding LN only); bf16 in, f32 math."""
    M, H = x.shape
    tm = _pick_tile(M, 512, 16)
    return pl.pallas_call(
        functools.partial(_ln_kernel, eps=eps),
        out_shape=jax.ShapeDtypeStruct((M, H), out_dtype),
        grid=(M // tm,),
        in_specs=[pl.BlockSpec((tm, H), lambda i: (i, 0)),
                  pl.BlockSpec((1, H), lambda i: (0, 0)),
                  pl.BlockSpec((1, H), lambda i: (0, 0))],
        out_specs=pl.BlockSpec((tm, H), lambda i: (i, 0)),
        compiler_params=pltpu.CompilerParams(
            dimension_semantics=("parallel",),
            vmem_limit_bytes=_VMEM_LIMIT),
    )(x, gamma.reshape(1, H).astype(jnp.float32),
      beta.reshape(1, H).astype(jnp.float32))


# ------------------------------ attention kernel -----------------------------

def _heads_per_block(num_heads, dh):
    """Pack heads so the block's lane dimension is >=128 (or the full H)."""
    H = num_heads * dh
    if H <= 128:
        return num_heads
    hpb = max(1, 128 // dh)
    while hpb > 1 and num_heads % hpb != 0:
        hpb -= 1
    if (hpb * dh) % 128 != 0 and hpb * dh != H:
        return num_heads           # fall back to a full-H block (always legal)
    return hpb


def pallas_attention_fused_qkv(qkv, B, S, H, num_heads):
    """Per-head scaled dot-product attention consuming the fused QKV activation.

    qkv: (B*S, 3H) bf16 straight from the fused QKV matmul (1/sqrt(dh) already
    folded into the Q projection weights).  Q/K/V head-group windows are carved
    out of the (B, S, 3H) view by three column-offset BlockSpecs, so there is no
    XLA slice/reshape copy between the matmul and attention.  Each packed head's
    context is stored directly into its output lane window (no concatenate).
    """
    dh = H // num_heads
    hpb = _heads_per_block(num_heads, dh)
    G = hpb * dh
    n_groups = H // G

    def kernel(q_ref, k_ref, v_ref, o_ref):
        qb = q_ref[0]                                   # (S, G) bf16
        kb = k_ref[0]
        vb = v_ref[0]
        for hh in range(hpb):                           # static unroll over packed heads
            lo = hh * dh
            qh = qb[:, lo:lo + dh]
            kh = kb[:, lo:lo + dh]
            vh = vb[:, lo:lo + dh]
            s = jax.lax.dot_general(qh, kh, (((1,), (1,)), ((), ())),
                                    preferred_element_type=jnp.float32)   # (S, S)
            s = s - jnp.max(s, axis=-1, keepdims=True)
            p = jnp.exp(s)
            p = p * pl.reciprocal(jnp.sum(p, axis=-1, keepdims=True), approx=True)
            ctx = jnp.dot(p.astype(vh.dtype), vh, preferred_element_type=jnp.float32)
            # direct per-head store: no list+concatenate, live range ends here
            o_ref[0, :, lo:lo + dh] = ctx.astype(o_ref.dtype)

    qkv3 = qkv.reshape(B, S, 3 * H)        # free reshape (only splits the leading dim)

    if G % 128 == 0:
        # lane-dense, 128-aligned head-group windows carved out of (B, S, 3H)
        blk = (1, S, G)
        in_specs = [pl.BlockSpec(blk, lambda b, g: (b, 0, g)),
                    pl.BlockSpec(blk, lambda b, g: (b, 0, n_groups + g)),
                    pl.BlockSpec(blk, lambda b, g: (b, 0, 2 * n_groups + g))]
        operands = (qkv3, qkv3, qkv3)
    else:
        # TODO(synk): window narrower than one 128-lane tile (tiny H only) — fall back
        # to XLA slices so every BlockSpec stays (8,128)-legal.
        q = qkv3[:, :, :H]
        k = qkv3[:, :, H:2 * H]
        v = qkv3[:, :, 2 * H:]
        spec = pl.BlockSpec((1, S, G), lambda b, g: (b, 0, g))
        in_specs = [spec, spec, spec]
        operands = (q, k, v)

    out = pl.pallas_call(
        kernel,
        out_shape=jax.ShapeDtypeStruct((B, S, H), qkv.dtype),
        grid=(B, n_groups),     # B*n_groups >= 2 keeps both v7x TensorCores busy
        in_specs=in_specs,
        out_specs=pl.BlockSpec((1, S, G), lambda b, g: (b, 0, g)),
        compiler_params=pltpu.CompilerParams(
            dimension_semantics=("parallel", "parallel"),
            vmem_limit_bytes=_VMEM_LIMIT),
    )(*operands)
    return out.reshape(B * S, H)            # free reshape (merges leading dims)


# ----------------------- fused classifier + softmax(dim=1) -------------------

def pallas_fc_softmax_dim1(h, w_padded, b_padded, B, S, num_classes):
    """Fused final Linear + nn.Softmax(dim=1) (softmax over the sequence axis).

    h:(B*S, H) bf16; w_padded:(H, Cp) bf16 with Cp a multiple of 128 so output
    stores are lane-dense; the padded (zero-weight) logit columns are sliced
    off in the wrapper.  Exact division keeps column sums == 1 to f32 precision.
    """
    M, H = h.shape
    Cp = w_padded.shape[1]

    def kernel(x_ref, w_ref, b_ref, o_ref):
        logits = jnp.dot(x_ref[...], w_ref[...],
                         preferred_element_type=jnp.float32) + b_ref[...]
        m = jnp.max(logits, axis=0, keepdims=True)      # reduce over the S axis
        e = jnp.exp(logits - m)
        o_ref[...] = (e / jnp.sum(e, axis=0, keepdims=True)).astype(o_ref.dtype)

    # TODO(synk): for B == 1 on v7x this grid has a single parallel step (one TC idle);
    # acceptable for this tiny epilogue.
    out = pl.pallas_call(
        kernel,
        out_shape=jax.ShapeDtypeStruct((M, Cp), jnp.float32),
        grid=(B,),
        in_specs=[pl.BlockSpec((S, H), lambda b: (b, 0)),
                  pl.BlockSpec((H, Cp), lambda b: (0, 0)),
                  pl.BlockSpec((1, Cp), lambda b: (0, 0))],
        out_specs=pl.BlockSpec((S, Cp), lambda b: (b, 0)),
        compiler_params=pltpu.CompilerParams(
            dimension_semantics=("parallel",),
            vmem_limit_bytes=_VMEM_LIMIT),
    )(h, w_padded, b_padded.reshape(1, Cp).astype(jnp.float32))
    return out.reshape(B, S, Cp)[:, :, :num_classes]


# -------------------------------- BertNN model -------------------------------

def init_params(key, vocab, max_pos, hidden, n_layers, inter, num_classes, num_heads):
    cnt = [0]

    def nxt():
        cnt[0] += 1
        return jax.random.fold_in(key, cnt[0])

    def nrm(shape, scale=0.02):
        return (scale * jax.random.normal(nxt(), shape)).astype(jnp.float32)

    H = hidden
    dh = H // num_heads
    scale = 1.0 / (dh ** 0.5)
    cp = max(128, ((num_classes + 127) // 128) * 128)   # lane-dense classifier width

    fc_w = nrm((H, num_classes))
    fc_w_padded = jnp.zeros((H, cp), jnp.float32).at[:, :num_classes].set(fc_w)
    fc_b_padded = jnp.zeros((cp,), jnp.float32)

    params = {
        "word_emb": nrm((vocab, H)),
        "pos_emb": nrm((max_pos, H)),
        "type_emb": nrm((2, H)),
        "emb_ln_g": jnp.ones((H,), jnp.float32),
        "emb_ln_b": jnp.zeros((H,), jnp.float32),
        "fc_w": fc_w_padded.astype(jnp.bfloat16),
        "fc_b": fc_b_padded,
        "layers": [],
    }
    for _ in range(n_layers):
        wq, wk, wv = nrm((H, H)), nrm((H, H)), nrm((H, H))
        bq = jnp.zeros((H,), jnp.float32)
        bk = jnp.zeros((H,), jnp.float32)
        bv = jnp.zeros((H,), jnp.float32)
        # fuse Q/K/V into one (H, 3H) weight; fold 1/sqrt(dh) into the Q projection
        wqkv = jnp.concatenate([wq * scale, wk, wv], axis=1)
        bqkv = jnp.concatenate([bq * scale, bk, bv], axis=0)
        params["layers"].append({
            "wqkv": wqkv.astype(jnp.bfloat16), "bqkv": bqkv,
            "wo": nrm((H, H)).astype(jnp.bfloat16), "bo": jnp.zeros((H,), jnp.float32),
            "ln1_g": jnp.ones((H,), jnp.float32), "ln1_b": jnp.zeros((H,), jnp.float32),
            "w1": nrm((H, inter)).astype(jnp.bfloat16), "b1": jnp.zeros((inter,), jnp.float32),
            "w2": nrm((inter, H)).astype(jnp.bfloat16), "b2": jnp.zeros((H,), jnp.float32),
            "ln2_g": jnp.ones((H,), jnp.float32), "ln2_b": jnp.zeros((H,), jnp.float32),
        })
    return params


def bert_nn_forward(params, token_ids, *, num_heads, num_classes):
    B, S = token_ids.shape
    H = params["word_emb"].shape[1]

    # Embeddings (gathers stay in plain JAX glue); token_type_ids == 0.
    emb = (params["word_emb"][token_ids]
           + params["pos_emb"][:S][None, :, :]
           + params["type_emb"][0][None, None, :])                    # (B, S, H) f32
    # bf16 input to the memory-bound embedding LN (mean/var math stays f32 in-kernel)
    h = pallas_layernorm(emb.astype(jnp.bfloat16).reshape(B * S, H),
                         params["emb_ln_g"], params["emb_ln_b"])      # (B*S, H) bf16

    for lyr in params["layers"]:
        # fused QKV projection: one tiled matmul against the concatenated (H, 3H) weight
        qkv = pallas_linear(h, lyr["wqkv"], lyr["bqkv"])              # (B*S, 3H) bf16

        # TODO(synk): no attention/padding mask (matches calling torch BertModel without one)
        # Q/K/V consumed directly out of the fused activation (column-offset BlockSpecs).
        ctx = pallas_attention_fused_qkv(qkv, B, S, H, num_heads)     # (B*S, H) bf16

        # attention output projection + residual add + LayerNorm fused in one kernel
        h = pallas_linear(ctx, lyr["wo"], lyr["bo"],
                          ln_residual=h, ln_gamma=lyr["ln1_g"], ln_beta=lyr["ln1_b"])

        # FFN: GELU fused into the first matmul; residual + LayerNorm into the second
        ff = pallas_linear(h, lyr["w1"], lyr["b1"], activation="gelu")
        h = pallas_linear(ff, lyr["w2"], lyr["b2"],
                          ln_residual=h, ln_gamma=lyr["ln2_g"], ln_beta=lyr["ln2_b"])

    # self.fc + self.softmax(dim=1) fused, then .squeeze() (mirrors torch semantics)
    probs = pallas_fc_softmax_dim1(h, params["fc_w"], params["fc_b"], B, S, num_classes)
    return jnp.squeeze(probs)


# ----------------------------------- main ------------------------------------

if __name__ == "__main__":
    # H = 128 keeps the attention head-group windows 128-lane dense (like dh=64,
    # 2-heads-per-group BERT-base) while staying small.
    B, S = 2, 8
    HIDDEN, NUM_HEADS, N_LAYERS, INTER = 128, 4, 2, 256
    VOCAB, MAX_POS, NUM_CLASSES = 50, 16, 3

    key = jax.random.PRNGKey(0)
    params = init_params(key, VOCAB, MAX_POS, HIDDEN, N_LAYERS, INTER,
                         NUM_CLASSES, NUM_HEADS)
    token_ids = jax.random.randint(jax.random.fold_in(key, 999), (B, S), 0, VOCAB)

    fwd = jax.jit(functools.partial(bert_nn_forward,
                                    num_heads=NUM_HEADS, num_classes=NUM_CLASSES))
    out = fwd(params, token_ids)
    jax.block_until_ready(out)

    assert out.shape == (B, S, NUM_CLASSES), out.shape
    # softmax(dim=1): columns over the sequence axis sum to 1
    assert jnp.allclose(out.sum(axis=1), 1.0, atol=1e-5)
    print("KERNEL_OK")
</pallas_src>

<mosaic_0001>
module attributes {stable_mosaic.version = 11 : i64} {
  func.func @_ln_kernel(%arg0: i32, %arg1: memref<16x128xbf16, #tpu.memory_space<vmem>>, %arg2: memref<1x128xf32, #tpu.memory_space<vmem>>, %arg3: memref<1x128xf32, #tpu.memory_space<vmem>>, %arg4: memref<16x128xbf16, #tpu.memory_space<vmem>>) attributes {dimension_semantics = [#tpu.dimension_semantics<parallel>], iteration_bounds = array<i64: 1>, scalar_prefetch = 0 : i64, scratch_operands = 0 : i64, tpu.core_type = #tpu.core_type<tc>, window_params = [{transform_indices = @transform_0, window_bounds = array<i64: 16, 128>}, {pipeline_mode = #tpu.pipeline_mode<synchronous>, transform_indices = @transform_1, window_bounds = array<i64: 1, 128>}, {pipeline_mode = #tpu.pipeline_mode<synchronous>, transform_indices = @transform_2, window_bounds = array<i64: 1, 128>}, {transform_indices = @transform_3, window_bounds = array<i64: 16, 128>}]} {
    %c0 = arith.constant 0 : index
    %c0_0 = arith.constant 0 : index
    %0 = vector.load %arg1[%c0, %c0_0] : memref<16x128xbf16, #tpu.memory_space<vmem>>, vector<16x128xbf16>
    %1 = arith.extf %0 : vector<16x128xbf16> to vector<16x128xf32>
    %cst = arith.constant dense<0.000000e+00> : vector<16xf32>
    %2 = vector.multi_reduction <add>, %1, %cst [1] : vector<16x128xf32> to vector<16xf32>
    %3 = vector.shape_cast %2 : vector<16xf32> to vector<16x1xf32>
    %cst_1 = arith.constant 1.280000e+02 : f32
    %4 = vector.broadcast %cst_1 : f32 to vector<16x1xf32>
    %5 = arith.divf %3, %4 : vector<16x1xf32>
    %6 = vector.broadcast %5 : vector<16x1xf32> to vector<16x128xf32>
    %7 = arith.subf %1, %6 : vector<16x128xf32>
    %8 = arith.mulf %7, %7 : vector<16x128xf32>
    %cst_2 = arith.constant dense<0.000000e+00> : vector<16xf32>
    %9 = vector.multi_reduction <add>, %8, %cst_2 [1] : vector<16x128xf32> to vector<16xf32>
    %10 = vector.shape_cast %9 : vector<16xf32> to vector<16x1xf32>
    %cst_3 = arith.constant 1.280000e+02 : f32
    %11 = vector.broadcast %cst_3 : f32 to vector<16x1xf32>
    %12 = arith.divf %10, %11 : vector<16x1xf32>
    %cst_4 = arith.constant 9.99999996E-13 : f32
    %13 = vector.broadcast %cst_4 : f32 to vector<16x1xf32>
    %14 = arith.addf %12, %13 : vector<16x1xf32>
    %15 = math.rsqrt %14 : vector<16x1xf32>
    %16 = vector.broadcast %15 : vector<16x1xf32> to vector<16x128xf32>
    %17 = arith.mulf %7, %16 : vector<16x128xf32>
    %c0_5 = arith.constant 0 : index
    %c0_6 = arith.constant 0 : index
    %18 = vector.load %arg2[%c0_5, %c0_6] : memref<1x128xf32, #tpu.memory_space<vmem>>, vector<1x128xf32>
    %19 = vector.broadcast %18 : vector<1x128xf32> to vector<16x128xf32>
    %20 = arith.mulf %17, %19 : vector<16x128xf32>
    %c0_7 = arith.constant 0 : index
    %c0_8 = arith.constant 0 : index
    %21 = vector.load %arg3[%c0_7, %c0_8] : memref<1x128xf32, #tpu.memory_space<vmem>>, vector<1x128xf32>
    %22 = vector.broadcast %21 : vector<1x128xf32> to vector<16x128xf32>
    %23 = arith.addf %20, %22 : vector<16x128xf32>
    %24 = arith.truncf %23 : vector<16x128xf32> to vector<16x128xbf16>
    %c0_9 = arith.constant 0 : index
    %c0_10 = arith.constant 0 : index
    %25 = vector.load %arg4[%c0_9, %c0_10] : memref<16x128xbf16, #tpu.memory_space<vmem>>, vector<16x128xbf16>
    tpu.vector_store %arg4[%c0_9, %c0_10], %24 {strides = array<i32>} : memref<16x128xbf16, #tpu.memory_space<vmem>>, vector<16x128xbf16>,
    return
  }
  func.func @transform_0(%arg0: i32) -> (i32, i32) {
    %c0_i32 = arith.constant 0 : i32
    %c0_i32_0 = arith.constant 0 : i32
    return %arg0, %c0_i32 : i32, i32
  }
  func.func @transform_1(%arg0: i32) -> (i32, i32) {
    %c0_i32 = arith.constant 0 : i32
    %c0_i32_0 = arith.constant 0 : i32
    %c0_i32_1 = arith.constant 0 : i32
    return %c0_i32, %c0_i32_0 : i32, i32
  }
  func.func @transform_2(%arg0: i32) -> (i32, i32) {
    %c0_i32 = arith.constant 0 : i32
    %c0_i32_0 = arith.constant 0 : i32
    %c0_i32_1 = arith.constant 0 : i32
    return %c0_i32, %c0_i32_0 : i32, i32
  }
  func.func @transform_3(%arg0: i32) -> (i32, i32) {
    %c0_i32 = arith.constant 0 : i32
    %c0_i32_0 = arith.constant 0 : i32
    return %arg0, %c0_i32 : i32, i32
  }
}

module attributes {stable_mosaic.version = 11 : i64} {
  func.func @_matmul_kernel(%arg0: i32, %arg1: i32, %arg2: i32, %arg3: memref<16x128xbf16, #tpu.memory_space<vmem>>, %arg4: memref<128x384xbf16, #tpu.memory_space<vmem>>, %arg5: memref<1x384xf32, #tpu.memory_space<vmem>>, %arg6: memref<16x384xbf16, #tpu.memory_space<vmem>>, %arg7: memref<16x384xf32, #tpu.memory_space<vmem>>) attributes {dimension_semantics = [#tpu.dimension_semantics<parallel>, #tpu.dimension_semantics<parallel>, #tpu.dimension_semantics<arbitrary>], iteration_bounds = array<i64: 1, 1, 1>, scalar_prefetch = 0 : i64, scratch_operands = 1 : i64, tpu.core_type = #tpu.core_type<tc>, window_params = [{transform_indices = @transform_0, window_bounds = array<i64: 16, 128>}, {transform_indices = @transform_1, window_bounds = array<i64: 128, 384>}, {transform_indices = @transform_2, window_bounds = array<i64: 1, 384>}, {transform_indices = @transform_3, window_bounds = array<i64: 16, 384>}]} {
    %c0_i32 = arith.constant 0 : i32
    %0 = arith.cmpi eq, %arg2, %c0_i32 : i32
    %1 = arith.extui %0 : i1 to i32
    %c0_i32_0 = arith.constant 0 : i32
    %2 = arith.cmpi ne, %1, %c0_i32_0 : i32
    scf.if %2 {
      %cst_10 = arith.constant 0.000000e+00 : f32
      %12 = vector.broadcast %cst_10 : f32 to vector<16x384xf32>
      %c0_11 = arith.constant 0 : index
      %c0_12 = arith.constant 0 : index
      %13 = vector.load %arg7[%c0_11, %c0_12] : memref<16x384xf32, #tpu.memory_space<vmem>>, vector<16x384xf32>
      tpu.vector_store %arg7[%c0_11, %c0_12], %12 {strides = array<i32>} : memref<16x384xf32, #tpu.memory_space<vmem>>, vector<16x384xf32>,
    } else {
    }
    %c0 = arith.constant 0 : index
    %c0_1 = arith.constant 0 : index
    %3 = vector.load %arg7[%c0, %c0_1] : memref<16x384xf32, #tpu.memory_space<vmem>>, vector<16x384xf32>
    %c0_2 = arith.constant 0 : index
    %c0_3 = arith.constant 0 : index
    %4 = vector.load %arg3[%c0_2, %c0_3] : memref<16x128xbf16, #tpu.memory_space<vmem>>, vector<16x128xbf16>
    %c0_4 = arith.constant 0 : index
    %c0_5 = arith.constant 0 : index
    %5 = vector.load %arg4[%c0_4, %c0_5] : memref<128x384xbf16, #tpu.memory_space<vmem>>, vector<128x384xbf16>
    %cst = arith.constant dense<0.000000e+00> : vector<16x384xf32>
    %6 = tpu.matmul %4, %5, %cst {dimension_numbers = #tpu.dot_dimension_numbers<[1], [0], [0], [1], [0, 0, 1, 1], [], []>} : vector<16x128xbf16>, vector<128x384xbf16>, vector<16x384xf32> -> vector<16x384xf32>
    %7 = arith.addf %3, %6 : vector<16x384xf32>
    %c0_6 = arith.constant 0 : index
    %c0_7 = arith.constant 0 : index
    %8 = vector.load %arg7[%c0_6, %c0_7] : memref<16x384xf32, #tpu.memory_space<vmem>>, vector<16x384xf32>
    tpu.vector_store %arg7[%c0_6, %c0_7], %7 {strides = array<i32>} : memref<16x384xf32, #tpu.memory_space<vmem>>, vector<16x384xf32>,
    %c0_i32_8 = arith.constant 0 : i32
    %9 = arith.cmpi eq, %arg2, %c0_i32_8 : i32
    %10 = arith.extui %9 : i1 to i32
    %c0_i32_9 = arith.constant 0 : i32
    %11 = arith.cmpi ne, %10, %c0_i32_9 : i32
    scf.if %11 {
      %c0_10 = arith.constant 0 : index
      %c0_11 = arith.constant 0 : index
      %12 = vector.load %arg7[%c0_10, %c0_11] : memref<16x384xf32, #tpu.memory_space<vmem>>, vector<16x384xf32>
      %c0_12 = arith.constant 0 : index
      %c0_13 = arith.constant 0 : index
      %13 = vector.load %arg5[%c0_12, %c0_13] : memref<1x384xf32, #tpu.memory_space<vmem>>, vector<1x384xf32>
      %14 = vector.broadcast %13 : vector<1x384xf32> to vector<16x384xf32>
      %15 = arith.addf %12, %14 : vector<16x384xf32>
      %16 = arith.truncf %15 : vector<16x384xf32> to vector<16x384xbf16>
      %c0_14 = arith.constant 0 : index
      %c0_15 = arith.constant 0 : index
      %17 = vector.load %arg6[%c0_14, %c0_15] : memref<16x384xbf16, #tpu.memory_space<vmem>>, vector<16x384xbf16>
      tpu.vector_store %arg6[%c0_14, %c0_15], %16 {strides = array<i32>} : memref<16x384xbf16, #tpu.memory_space<vmem>>, vector<16x384xbf16>,
    } else {
    }
    return
  }
  func.func @transform_0(%arg0: i32, %arg1: i32, %arg2: i32) -> (i32, i32) {
    %c0_i32 = arith.constant 0 : i32
    return %arg0, %arg2 : i32, i32
  }
  func.func @transform_1(%arg0: i32, %arg1: i32, %arg2: i32) -> (i32, i32) {
    %c0_i32 = arith.constant 0 : i32
    return %arg2, %arg1 : i32, i32
  }
  func.func @transform_2(%arg0: i32, %arg1: i32, %arg2: i32) -> (i32, i32) {
    %c0_i32 = arith.constant 0 : i32
    %c0_i32_0 = arith.constant 0 : i32
    return %c0_i32, %arg1 : i32, i32
  }
  func.func @transform_3(%arg0: i32, %arg1: i32, %arg2: i32) -> (i32, i32) {
    %c0_i32 = arith.constant 0 : i32
    return %arg0, %arg1 : i32, i32
  }
}

module attributes {stable_mosaic.version = 11 : i64} {
  func.func @_matmul_ln_kernel(%arg0: i32, %arg1: i32, %arg2: i32, %arg3: memref<16x128xbf16, #tpu.memory_space<vmem>>, %arg4: memref<128x128xbf16, #tpu.memory_space<vmem>>, %arg5: memref<1x128xf32, #tpu.memory_space<vmem>>, %arg6: memref<16x128xbf16, #tpu.memory_space<vmem>>, %arg7: memref<1x128xf32, #tpu.memory_space<vmem>>, %arg8: memref<1x128xf32, #tpu.memory_space<vmem>>, %arg9: memref<16x128xbf16, #tpu.memory_space<vmem>>, %arg10: memref<16x128xf32, #tpu.memory_space<vmem>>) attributes {dimension_semantics = [#tpu.dimension_semantics<parallel>, #tpu.dimension_semantics<parallel>, #tpu.dimension_semantics<arbitrary>], iteration_bounds = array<i64: 1, 1, 1>, scalar_prefetch = 0 : i64, scratch_operands = 1 : i64, tpu.core_type = #tpu.core_type<tc>, window_params = [{transform_indices = @transform_0, window_bounds = array<i64: 16, 128>}, {transform_indices = @transform_1, window_bounds = array<i64: 128, 128>}, {transform_indices = @transform_2, window_bounds = array<i64: 1, 128>}, {transform_indices = @transform_3, window_bounds = array<i64: 16, 128>}, {transform_indices = @transform_4, window_bounds = array<i64: 1, 128>}, {transform_indices = @transform_5, window_bounds = array<i64: 1, 128>}, {transform_indices = @transform_6, window_bounds = array<i64: 16, 128>}]} {
    %c0_i32 = arith.constant 0 : i32
    %0 = arith.cmpi eq, %arg2, %c0_i32 : i32
    %1 = arith.extui %0 : i1 to i32
    %c0_i32_0 = arith.constant 0 : i32
    %2 = arith.cmpi ne, %1, %c0_i32_0 : i32
    scf.if %2 {
      %cst_10 = arith.constant 0.000000e+00 : f32
      %12 = vector.broadcast %cst_10 : f32 to vector<16x128xf32>
      %c0_11 = arith.constant 0 : index
      %c0_12 = arith.constant 0 : index
      %13 = vector.load %arg10[%c0_11, %c0_12] : memref<16x128xf32, #tpu.memory_space<vmem>>, vector<16x128xf32>
      tpu.vector_store %arg10[%c0_11, %c0_12], %12 {strides = array<i32>} : memref<16x128xf32, #tpu.memory_space<vmem>>, vector<16x128xf32>,
    } else {
    }
    %c0 = arith.constant 0 : index
    %c0_1 = arith.constant 0 : index
    %3 = vector.load %arg10[%c0, %c0_1] : memref<16x128xf32, #tpu.memory_space<vmem>>, vector<16x128xf32>
    %c0_2 = arith.constant 0 : index
    %c0_3 = arith.constant 0 : index
    %4 = vector.load %arg3[%c0_2, %c0_3] : memref<16x128xbf16, #tpu.memory_space<vmem>>, vector<16x128xbf16>
    %c0_4 = arith.constant 0 : index
    %c0_5 = arith.constant 0 : index
    %5 = vector.load %arg4[%c0_4, %c0_5] : memref<128x128xbf16, #tpu.memory_space<vmem>>, vector<128x128xbf16>
    %cst = arith.constant dense<0.000000e+00> : vector<16x128xf32>
    %6 = tpu.matmul %4, %5, %cst {dimension_numbers = #tpu.dot_dimension_numbers<[1], [0], [0], [1], [0, 0, 1, 1], [], []>} : vector<16x128xbf16>, vector<128x128xbf16>, vector<16x128xf32> -> vector<16x128xf32>
    %7 = arith.addf %3, %6 : vector<16x128xf32>
    %c0_6 = arith.constant 0 : index
    %c0_7 = arith.constant 0 : index
    %8 = vector.load %arg10[%c0_6, %c0_7] : memref<16x128xf32, #tpu.memory_space<vmem>>, vector<16x128xf32>
    tpu.vector_store %arg10[%c0_6, %c0_7], %7 {strides = array<i32>} : memref<16x128xf32, #tpu.memory_space<vmem>>, vector<16x128xf32>,
    %c0_i32_8 = arith.constant 0 : i32
    %9 = arith.cmpi eq, %arg2, %c0_i32_8 : i32
    %10 = arith.extui %9 : i1 to i32
    %c0_i32_9 = arith.constant 0 : i32
    %11 = arith.cmpi ne, %10, %c0_i32_9 : i32
    scf.if %11 {
      %c0_10 = arith.constant 0 : index
      %c0_11 = arith.constant 0 : index
      %12 = vector.load %arg10[%c0_10, %c0_11] : memref<16x128xf32, #tpu.memory_space<vmem>>, vector<16x128xf32>
      %c0_12 = arith.constant 0 : index
      %c0_13 = arith.constant 0 : index
      %13 = vector.load %arg5[%c0_12, %c0_13] : memref<1x128xf32, #tpu.memory_space<vmem>>, vector<1x128xf32>
      %14 = vector.broadcast %13 : vector<1x128xf32> to vector<16x128xf32>
      %15 = arith.addf %12, %14 : vector<16x128xf32>
      %c0_14 = arith.constant 0 : index
      %c0_15 = arith.constant 0 : index
      %16 = vector.load %arg6[%c0_14, %c0_15] : memref<16x128xbf16, #tpu.memory_space<vmem>>, vector<16x128xbf16>
      %17 = arith.extf %16 : vector<16x128xbf16> to vector<16x128xf32>
      %18 = arith.addf %15, %17 : vector<16x128xf32>
      %cst_16 = arith.constant dense<0.000000e+00> : vector<16xf32>
      %19 = vector.multi_reduction <add>, %18, %cst_16 [1] : vector<16x128xf32> to vector<16xf32>
      %20 = vector.shape_cast %19 : vector<16xf32> to vector<16x1xf32>
      %cst_17 = arith.constant 1.280000e+02 : f32
      %21 = vector.broadcast %cst_17 : f32 to vector<16x1xf32>
      %22 = arith.divf %20, %21 : vector<16x1xf32>
      %23 = vector.broadcast %22 : vector<16x1xf32> to vector<16x128xf32>
      %24 = arith.subf %18, %23 : vector<16x128xf32>
      %25 = arith.mulf %24, %24 : vector<16x128xf32>
      %cst_18 = arith.constant dense<0.000000e+00> : vector<16xf32>
      %26 = vector.multi_reduction <add>, %25, %cst_18 [1] : vector<16x128xf32> to vector<16xf32>
      %27 = vector.shape_cast %26 : vector<16xf32> to vector<16x1xf32>
      %cst_19 = arith.constant 1.280000e+02 : f32
      %28 = vector.broadcast %cst_19 : f32 to vector<16x1xf32>
      %29 = arith.divf %27, %28 : vector<16x1xf32>
      %cst_20 = arith.constant 9.99999996E-13 : f32
      %30 = vector.broadcast %cst_20 : f32 to vector<16x1xf32>
      %31 = arith.addf %29, %30 : vector<16x1xf32>
      %32 = math.rsqrt %31 : vector<16x1xf32>
      %33 = vector.broadcast %32 : vector<16x1xf32> to vector<16x128xf32>
      %34 = arith.mulf %24, %33 : vector<16x128xf32>
      %c0_21 = arith.constant 0 : index
      %c0_22 = arith.constant 0 : index
      %35 = vector.load %arg7[%c0_21, %c0_22] : memref<1x128xf32, #tpu.memory_space<vmem>>, vector<1x128xf32>
      %36 = vector.broadcast %35 : vector<1x128xf32> to vector<16x128xf32>
      %37 = arith.mulf %34, %36 : vector<16x128xf32>
      %c0_23 = arith.constant 0 : index
      %c0_24 = arith.constant 0 : index
      %38 = vector.load %arg8[%c0_23, %c0_24] : memref<1x128xf32, #tpu.memory_space<vmem>>, vector<1x128xf32>
      %39 = vector.broadcast %38 : vector<1x128xf32> to vector<16x128xf32>
      %40 = arith.addf %37, %39 : vector<16x128xf32>
      %41 = arith.truncf %40 : vector<16x128xf32> to vector<16x128xbf16>
      %c0_25 = arith.constant 0 : index
      %c0_26 = arith.constant 0 : index
      %42 = vector.load %arg9[%c0_25, %c0_26] : memref<16x128xbf16, #tpu.memory_space<vmem>>, vector<16x128xbf16>
      tpu.vector_store %arg9[%c0_25, %c0_26], %41 {strides = array<i32>} : memref<16x128xbf16, #tpu.memory_space<vmem>>, vector<16x128xbf16>,
    } else {
    }
    return
  }
  func.func @transform_0(%arg0: i32, %arg1: i32, %arg2: i32) -> (i32, i32) {
    %c0_i32 = arith.constant 0 : i32
    return %arg0, %arg2 : i32, i32
  }
  func.func @transform_1(%arg0: i32, %arg1: i32, %arg2: i32) -> (i32, i32) {
    %c0_i32 = arith.constant 0 : i32
    return %arg2, %arg1 : i32, i32
  }
  func.func @transform_2(%arg0: i32, %arg1: i32, %arg2: i32) -> (i32, i32) {
    %c0_i32 = arith.constant 0 : i32
    %c0_i32_0 = arith.constant 0 : i32
    return %c0_i32, %arg1 : i32, i32
  }
  func.func @transform_3(%arg0: i32, %arg1: i32, %arg2: i32) -> (i32, i32) {
    %c0_i32 = arith.constant 0 : i32
    return %arg0, %arg1 : i32, i32
  }
  func.func @transform_4(%arg0: i32, %arg1: i32, %arg2: i32) -> (i32, i32) {
    %c0_i32 = arith.constant 0 : i32
    %c0_i32_0 = arith.constant 0 : i32
    return %c0_i32, %arg1 : i32, i32
  }
  func.func @transform_5(%arg0: i32, %arg1: i32, %arg2: i32) -> (i32, i32) {
    %c0_i32 = arith.constant 0 : i32
    %c0_i32_0 = arith.constant 0 : i32
    return %c0_i32, %arg1 : i32, i32
  }
  func.func @transform_6(%arg0: i32, %arg1: i32, %arg2: i32) -> (i32, i32) {
    %c0_i32 = arith.constant 0 : i32
    return %arg0, %arg1 : i32, i32
  }
}

module attributes {stable_mosaic.version = 11 : i64} {
  func.func @kernel(%arg0: i32, %arg1: i32, %arg2: memref<1x8x128xbf16, #tpu.memory_space<vmem>>, %arg3: memref<1x8x128xbf16, #tpu.memory_space<vmem>>, %arg4: memref<1x8x128xbf16, #tpu.memory_space<vmem>>, %arg5: memref<1x8x128xbf16, #tpu.memory_space<vmem>>) attributes {dimension_semantics = [#tpu.dimension_semantics<parallel>, #tpu.dimension_semantics<parallel>], iteration_bounds = array<i64: 2, 1>, scalar_prefetch = 0 : i64, scratch_operands = 0 : i64, tpu.core_type = #tpu.core_type<tc>, window_params = [{transform_indices = @transform_0, window_bounds = array<i64: 1, 8, 128>}, {transform_indices = @transform_1, window_bounds = array<i64: 1, 8, 128>}, {transform_indices = @transform_2, window_bounds = array<i64: 1, 8, 128>}, {transform_indices = @transform_3, window_bounds = array<i64: 1, 8, 128>}]} {
    %c0 = arith.constant 0 : index
    %c0_0 = arith.constant 0 : index
    %c0_1 = arith.constant 0 : index
    %0 = vector.load %arg2[%c0, %c0_0, %c0_1] : memref<1x8x128xbf16, #tpu.memory_space<vmem>>, vector<1x8x128xbf16>
    %1 = vector.shape_cast %0 : vector<1x8x128xbf16> to vector<8x128xbf16>
    %c0_2 = arith.constant 0 : index
    %c0_3 = arith.constant 0 : index
    %c0_4 = arith.constant 0 : index
    %2 = vector.load %arg3[%c0_2, %c0_3, %c0_4] : memref<1x8x128xbf16, #tpu.memory_space<vmem>>, vector<1x8x128xbf16>
    %3 = vector.shape_cast %2 : vector<1x8x128xbf16> to vector<8x128xbf16>
    %c0_5 = arith.constant 0 : index
    %c0_6 = arith.constant 0 : index
    %c0_7 = arith.constant 0 : index
    %4 = vector.load %arg4[%c0_5, %c0_6, %c0_7] : memref<1x8x128xbf16, #tpu.memory_space<vmem>>, vector<1x8x128xbf16>
    %5 = vector.shape_cast %4 : vector<1x8x128xbf16> to vector<8x128xbf16>
    %6 = vector.extract_strided_slice %1 {offsets = [0, 0], sizes = [8, 32], strides = [1, 1]} : vector<8x128xbf16> to vector<8x32xbf16>
    %7 = vector.extract_strided_slice %3 {offsets = [0, 0], sizes = [8, 32], strides = [1, 1]} : vector<8x128xbf16> to vector<8x32xbf16>
    %8 = vector.extract_strided_slice %5 {offsets = [0, 0], sizes = [8, 32], strides = [1, 1]} : vector<8x128xbf16> to vector<8x32xbf16>
    %cst = arith.constant dense<0.000000e+00> : vector<8x8xf32>
    %9 = tpu.matmul %6, %7, %cst {dimension_numbers = #tpu.dot_dimension_numbers<[1], [1], [0], [0], [0, 0, 1, 0], [], []>} : vector<8x32xbf16>, vector<8x32xbf16>, vector<8x8xf32> -> vector<8x8xf32>
    %cst_8 = arith.constant dense<0xFF800000> : vector<8xf32>
    %10 = vector.multi_reduction <maximumf>, %9, %cst_8 [1] : vector<8x8xf32> to vector<8xf32>
    %11 = vector.shape_cast %10 : vector<8xf32> to vector<8x1xf32>
    %12 = vector.broadcast %11 : vector<8x1xf32> to vector<8x8xf32>
    %13 = arith.subf %9, %12 : vector<8x8xf32>
    %14 = math.exp %13 : vector<8x8xf32>
    %cst_9 = arith.constant dense<0.000000e+00> : vector<8xf32>
    %15 = vector.multi_reduction <add>, %14, %cst_9 [1] : vector<8x8xf32> to vector<8xf32>
    %16 = vector.shape_cast %15 : vector<8xf32> to vector<8x1xf32>
    %17 = tpu.reciprocal %16 {approx = true} : vector<8x1xf32> -> vector<8x1xf32>
    %18 = vector.broadcast %17 : vector<8x1xf32> to vector<8x8xf32>
    %19 = arith.mulf %14, %18 : vector<8x8xf32>
    %20 = arith.truncf %19 : vector<8x8xf32> to vector<8x8xbf16>
    %cst_10 = arith.constant dense<0.000000e+00> : vector<8x32xf32>
    %21 = tpu.matmul %20, %8, %cst_10 {dimension_numbers = #tpu.dot_dimension_numbers<[1], [0], [0], [1], [0, 0, 1, 1], [], []>} : vector<8x8xbf16>, vector<8x32xbf16>, vector<8x32xf32> -> vector<8x32xf32>
    %22 = arith.truncf %21 : vector<8x32xf32> to vector<8x32xbf16>
    %c0_11 = arith.constant 0 : index
    %c0_12 = arith.constant 0 : index
    %c0_13 = arith.constant 0 : index
    %23 = vector.load %arg5[%c0_11, %c0_12, %c0_13] : memref<1x8x128xbf16, #tpu.memory_space<vmem>>, vector<1x8x32xbf16>
    %24 = vector.shape_cast %23 : vector<1x8x32xbf16> to vector<8x32xbf16>
    %25 = vector.shape_cast %22 : vector<8x32xbf16> to vector<1x8x32xbf16>
    tpu.vector_store %arg5[%c0_11, %c0_12, %c0_13], %25 {strides = array<i32>} : memref<1x8x128xbf16, #tpu.memory_space<vmem>>, vector<1x8x32xbf16>,
    %26 = vector.extract_strided_slice %1 {offsets = [0, 32], sizes = [8, 32], strides = [1, 1]} : vector<8x128xbf16> to vector<8x32xbf16>
    %27 = vector.extract_strided_slice %3 {offsets = [0, 32], sizes = [8, 32], strides = [1, 1]} : vector<8x128xbf16> to vector<8x32xbf16>
    %28 = vector.extract_strided_slice %5 {offsets = [0, 32], sizes = [8, 32], strides = [1, 1]} : vector<8x128xbf16> to vector<8x32xbf16>
    %cst_14 = arith.constant dense<0.000000e+00> : vector<8x8xf32>
    %29 = tpu.matmul %26, %27, %cst_14 {dimension_numbers = #tpu.dot_dimension_numbers<[1], [1], [0], [0], [0, 0, 1, 0], [], []>} : vector<8x32xbf16>, vector<8x32xbf16>, vector<8x8xf32> -> vector<8x8xf32>
    %cst_15 = arith.constant dense<0xFF800000> : vector<8xf32>
    %30 = vector.multi_reduction <maximumf>, %29, %cst_15 [1] : vector<8x8xf32> to vector<8xf32>
    %31 = vector.shape_cast %30 : vector<8xf32> to vector<8x1xf32>
    %32 = vector.broadcast %31 : vector<8x1xf32> to vector<8x8xf32>
    %33 = arith.subf %29, %32 : vector<8x8xf32>
    %34 = math.exp %33 : vector<8x8xf32>
    %cst_16 = arith.constant dense<0.000000e+00> : vector<8xf32>
    %35 = vector.multi_reduction <add>, %34, %cst_16 [1] : vector<8x8xf32> to vector<8xf32>
    %36 = vector.shape_cast %35 : vector<8xf32> to vector<8x1xf32>
    %37 = tpu.reciprocal %36 {approx = true} : vector<8x1xf32> -> vector<8x1xf32>
    %38 = vector.broadcast %37 : vector<8x1xf32> to vector<8x8xf32>
    %39 = arith.mulf %34, %38 : vector<8x8xf32>
    %40 = arith.truncf %39 : vector<8x8xf32> to vector<8x8xbf16>
    %cst_17 = arith.constant dense<0.000000e+00> : vector<8x32xf32>
    %41 = tpu.matmul %40, %28, %cst_17 {dimension_numbers = #tpu.dot_dimension_numbers<[1], [0], [0], [1], [0, 0, 1, 1], [], []>} : vector<8x8xbf16>, vector<8x32xbf16>, vector<8x32xf32> -> vector<8x32xf32>
    %42 = arith.truncf %41 : vector<8x32xf32> to vector<8x32xbf16>
    %c0_18 = arith.constant 0 : index
    %c0_19 = arith.constant 0 : index
    %c32 = arith.constant 32 : index
    %43 = vector.load %arg5[%c0_18, %c0_19, %c32] : memref<1x8x128xbf16, #tpu.memory_space<vmem>>, vector<1x8x32xbf16>
    %44 = vector.shape_cast %43 : vector<1x8x32xbf16> to vector<8x32xbf16>
    %45 = vector.shape_cast %42 : vector<8x32xbf16> to vector<1x8x32xbf16>
    tpu.vector_store %arg5[%c0_18, %c0_19, %c32], %45 {strides = array<i32>} : memref<1x8x128xbf16, #tpu.memory_space<vmem>>, vector<1x8x32xbf16>,
    %46 = vector.extract_strided_slice %1 {offsets = [0, 64], sizes = [8, 32], strides = [1, 1]} : vector<8x128xbf16> to vector<8x32xbf16>
    %47 = vector.extract_strided_slice %3 {offsets = [0, 64], sizes = [8, 32], strides = [1, 1]} : vector<8x128xbf16> to vector<8x32xbf16>
    %48 = vector.extract_strided_slice %5 {offsets = [0, 64], sizes = [8, 32], strides = [1, 1]} : vector<8x128xbf16> to vector<8x32xbf16>
    %cst_20 = arith.constant dense<0.000000e+00> : vector<8x8xf32>
    %49 = tpu.matmul %46, %47, %cst_20 {dimension_numbers = #tpu.dot_dimension_numbers<[1], [1], [0], [0], [0, 0, 1, 0], [], []>} : vector<8x32xbf16>, vector<8x32xbf16>, vector<8x8xf32> -> vector<8x8xf32>
    %cst_21 = arith.constant dense<0xFF800000> : vector<8xf32>
    %50 = vector.multi_reduction <maximumf>, %49, %cst_21 [1] : vector<8x8xf32> to vector<8xf32>
    %51 = vector.shape_cast %50 : vector<8xf32> to vector<8x1xf32>
    %52 = vector.broadcast %51 : vector<8x1xf32> to vector<8x8xf32>
    %53 = arith.subf %49, %52 : vector<8x8xf32>
    %54 = math.exp %53 : vector<8x8xf32>
    %cst_22 = arith.constant dense<0.000000e+00> : vector<8xf32>
    %55 = vector.multi_reduction <add>, %54, %cst_22 [1] : vector<8x8xf32> to vector<8xf32>
    %56 = vector.shape_cast %55 : vector<8xf32> to vector<8x1xf32>
    %57 = tpu.reciprocal %56 {approx = true} : vector<8x1xf32> -> vector<8x1xf32>
    %58 = vector.broadcast %57 : vector<8x1xf32> to vector<8x8xf32>
    %59 = arith.mulf %54, %58 : vector<8x8xf32>
    %60 = arith.truncf %59 : vector<8x8xf32> to vector<8x8xbf16>
    %cst_23 = arith.constant dense<0.000000e+00> : vector<8x32xf32>
    %61 = tpu.matmul %60, %48, %cst_23 {dimension_numbers = #tpu.dot_dimension_numbers<[1], [0], [0], [1], [0, 0, 1, 1], [], []>} : vector<8x8xbf16>, vector<8x32xbf16>, vector<8x32xf32> -> vector<8x32xf32>
    %62 = arith.truncf %61 : vector<8x32xf32> to vector<8x32xbf16>
    %c0_24 = arith.constant 0 : index
    %c0_25 = arith.constant 0 : index
    %c64 = arith.constant 64 : index
    %63 = vector.load %arg5[%c0_24, %c0_25, %c64] : memref<1x8x128xbf16, #tpu.memory_space<vmem>>, vector<1x8x32xbf16>
    %64 = vector.shape_cast %63 : vector<1x8x32xbf16> to vector<8x32xbf16>
    %65 = vector.shape_cast %62 : vector<8x32xbf16> to vector<1x8x32xbf16>
    tpu.vector_store %arg5[%c0_24, %c0_25, %c64], %65 {strides = array<i32>} : memref<1x8x128xbf16, #tpu.memory_space<vmem>>, vector<1x8x32xbf16>,
    %66 = vector.extract_strided_slice %1 {offsets = [0, 96], sizes = [8, 32], strides = [1, 1]} : vector<8x128xbf16> to vector<8x32xbf16>
    %67 = vector.extract_strided_slice %3 {offsets = [0, 96], sizes = [8, 32], strides = [1, 1]} : vector<8x128xbf16> to vector<8x32xbf16>
    %68 = vector.extract_strided_slice %5 {offsets = [0, 96], sizes = [8, 32], strides = [1, 1]} : vector<8x128xbf16> to vector<8x32xbf16>
    %cst_26 = arith.constant dense<0.000000e+00> : vector<8x8xf32>
    %69 = tpu.matmul %66, %67, %cst_26 {dimension_numbers = #tpu.dot_dimension_numbers<[1], [1], [0], [0], [0, 0, 1, 0], [], []>} : vector<8x32xbf16>, vector<8x32xbf16>, vector<8x8xf32> -> vector<8x8xf32>
    %cst_27 = arith.constant dense<0xFF800000> : vector<8xf32>
    %70 = vector.multi_reduction <maximumf>, %69, %cst_27 [1] : vector<8x8xf32> to vector<8xf32>
    %71 = vector.shape_cast %70 : vector<8xf32> to vector<8x1xf32>
    %72 = vector.broadcast %71 : vector<8x1xf32> to vector<8x8xf32>
    %73 = arith.subf %69, %72 : vector<8x8xf32>
    %74 = math.exp %73 : vector<8x8xf32>
    %cst_28 = arith.constant dense<0.000000e+00> : vector<8xf32>
    %75 = vector.multi_reduction <add>, %74, %cst_28 [1] : vector<8x8xf32> to vector<8xf32>
    %76 = vector.shape_cast %75 : vector<8xf32> to vector<8x1xf32>
    %77 = tpu.reciprocal %76 {approx = true} : vector<8x1xf32> -> vector<8x1xf32>
    %78 = vector.broadcast %77 : vector<8x1xf32> to vector<8x8xf32>
    %79 = arith.mulf %74, %78 : vector<8x8xf32>
    %80 = arith.truncf %79 : vector<8x8xf32> to vector<8x8xbf16>
    %cst_29 = arith.constant dense<0.000000e+00> : vector<8x32xf32>
    %81 = tpu.matmul %80, %68, %cst_29 {dimension_numbers = #tpu.dot_dimension_numbers<[1], [0], [0], [1], [0, 0, 1, 1], [], []>} : vector<8x8xbf16>, vector<8x32xbf16>, vector<8x32xf32> -> vector<8x32xf32>
    %82 = arith.truncf %81 : vector<8x32xf32> to vector<8x32xbf16>
    %c0_30 = arith.constant 0 : index
    %c0_31 = arith.constant 0 : index
    %c96 = arith.constant 96 : index
    %83 = vector.load %arg5[%c0_30, %c0_31, %c96] : memref<1x8x128xbf16, #tpu.memory_space<vmem>>, vector<1x8x32xbf16>
    %84 = vector.shape_cast %83 : vector<1x8x32xbf16> to vector<8x32xbf16>
    %85 = vector.shape_cast %82 : vector<8x32xbf16> to vector<1x8x32xbf16>
    tpu.vector_store %arg5[%c0_30, %c0_31, %c96], %85 {strides = array<i32>} : memref<1x8x128xbf16, #tpu.memory_space<vmem>>, vector<1x8x32xbf16>,
    return
  }
  func.func @transform_0(%arg0: i32, %arg1: i32) -> (i32, i32, i32) {
    %c0_i32 = arith.constant 0 : i32
    %c0_i32_0 = arith.constant 0 : i32
    return %arg0, %c0_i32, %arg1 : i32, i32, i32
  }
  func.func @transform_1(%arg0: i32, %arg1: i32) -> (i32, i32, i32) {
    %c1_i32 = arith.constant 1 : i32
    %0 = arith.addi %c1_i32, %arg1 : i32
    %c0_i32 = arith.constant 0 : i32
    %c0_i32_0 = arith.constant 0 : i32
    return %arg0, %c0_i32, %0 : i32, i32, i32
  }
  func.func @transform_2(%arg0: i32, %arg1: i32) -> (i32, i32, i32) {
    %c2_i32 = arith.constant 2 : i32
    %0 = arith.addi %c2_i32, %arg1 : i32
    %c0_i32 = arith.constant 0 : i32
    %c0_i32_0 = arith.constant 0 : i32
    return %arg0, %c0_i32, %0 : i32, i32, i32
  }
  func.func @transform_3(%arg0: i32, %arg1: i32) -> (i32, i32, i32) {
    %c0_i32 = arith.constant 0 : i32
    %c0_i32_0 = arith.constant 0 : i32
    return %arg0, %c0_i32, %arg1 : i32, i32, i32
  }
}

module attributes {stable_mosaic.version = 11 : i64} {
  func.func @_matmul_kernel(%arg0: i32, %arg1: i32, %arg2: i32, %arg3: memref<16x128xbf16, #tpu.memory_space<vmem>>, %arg4: memref<128x256xbf16, #tpu.memory_space<vmem>>, %arg5: memref<1x256xf32, #tpu.memory_space<vmem>>, %arg6: memref<16x256xbf16, #tpu.memory_space<vmem>>, %arg7: memref<16x256xf32, #tpu.memory_space<vmem>>) attributes {dimension_semantics = [#tpu.dimension_semantics<parallel>, #tpu.dimension_semantics<parallel>, #tpu.dimension_semantics<arbitrary>], iteration_bounds = array<i64: 1, 1, 1>, scalar_prefetch = 0 : i64, scratch_operands = 1 : i64, tpu.core_type = #tpu.core_type<tc>, window_params = [{transform_indices = @transform_0, window_bounds = array<i64: 16, 128>}, {transform_indices = @transform_1, window_bounds = array<i64: 128, 256>}, {transform_indices = @transform_2, window_bounds = array<i64: 1, 256>}, {transform_indices = @transform_3, window_bounds = array<i64: 16, 256>}]} {
    %c0_i32 = arith.constant 0 : i32
    %0 = arith.cmpi eq, %arg2, %c0_i32 : i32
    %1 = arith.extui %0 : i1 to i32
    %c0_i32_0 = arith.constant 0 : i32
    %2 = arith.cmpi ne, %1, %c0_i32_0 : i32
    scf.if %2 {
      %cst_10 = arith.constant 0.000000e+00 : f32
      %12 = vector.broadcast %cst_10 : f32 to vector<16x256xf32>
      %c0_11 = arith.constant 0 : index
      %c0_12 = arith.constant 0 : index
      %13 = vector.load %arg7[%c0_11, %c0_12] : memref<16x256xf32, #tpu.memory_space<vmem>>, vector<16x256xf32>
      tpu.vector_store %arg7[%c0_11, %c0_12], %12 {strides = array<i32>} : memref<16x256xf32, #tpu.memory_space<vmem>>, vector<16x256xf32>,
    } else {
    }
    %c0 = arith.constant 0 : index
    %c0_1 = arith.constant 0 : index
    %3 = vector.load %arg7[%c0, %c0_1] : memref<16x256xf32, #tpu.memory_space<vmem>>, vector<16x256xf32>
    %c0_2 = arith.constant 0 : index
    %c0_3 = arith.constant 0 : index
    %4 = vector.load %arg3[%c0_2, %c0_3] : memref<16x128xbf16, #tpu.memory_space<vmem>>, vector<16x128xbf16>
    %c0_4 = arith.constant 0 : index
    %c0_5 = arith.constant 0 : index
    %5 = vector.load %arg4[%c0_4, %c0_5] : memref<128x256xbf16, #tpu.memory_space<vmem>>, vector<128x256xbf16>
    %cst = arith.constant dense<0.000000e+00> : vector<16x256xf32>
    %6 = tpu.matmul %4, %5, %cst {dimension_numbers = #tpu.dot_dimension_numbers<[1], [0], [0], [1], [0, 0, 1, 1], [], []>} : vector<16x128xbf16>, vector<128x256xbf16>, vector<16x256xf32> -> vector<16x256xf32>
    %7 = arith.addf %3, %6 : vector<16x256xf32>
    %c0_6 = arith.constant 0 : index
    %c0_7 = arith.constant 0 : index
    %8 = vector.load %arg7[%c0_6, %c0_7] : memref<16x256xf32, #tpu.memory_space<vmem>>, vector<16x256xf32>
    tpu.vector_store %arg7[%c0_6, %c0_7], %7 {strides = array<i32>} : memref<16x256xf32, #tpu.memory_space<vmem>>, vector<16x256xf32>,
    %c0_i32_8 = arith.constant 0 : i32
    %9 = arith.cmpi eq, %arg2, %c0_i32_8 : i32
    %10 = arith.extui %9 : i1 to i32
    %c0_i32_9 = arith.constant 0 : i32
    %11 = arith.cmpi ne, %10, %c0_i32_9 : i32
    scf.if %11 {
      %c0_10 = arith.constant 0 : index
      %c0_11 = arith.constant 0 : index
      %12 = vector.load %arg7[%c0_10, %c0_11] : memref<16x256xf32, #tpu.memory_space<vmem>>, vector<16x256xf32>
      %c0_12 = arith.constant 0 : index
      %c0_13 = arith.constant 0 : index
      %13 = vector.load %arg5[%c0_12, %c0_13] : memref<1x256xf32, #tpu.memory_space<vmem>>, vector<1x256xf32>
      %14 = vector.broadcast %13 : vector<1x256xf32> to vector<16x256xf32>
      %15 = arith.addf %12, %14 : vector<16x256xf32>
      %cst_14 = arith.constant 5.000000e-01 : f32
      %16 = vector.broadcast %cst_14 : f32 to vector<16x256xf32>
      %17 = arith.mulf %16, %15 : vector<16x256xf32>
      %cst_15 = arith.constant 4.471500e-02 : f32
      %18 = vector.broadcast %cst_15 : f32 to vector<16x256xf32>
      %19 = arith.mulf %18, %15 : vector<16x256xf32>
      %20 = arith.mulf %19, %15 : vector<16x256xf32>
      %21 = arith.mulf %20, %15 : vector<16x256xf32>
      %22 = arith.addf %15, %21 : vector<16x256xf32>
      %cst_16 = arith.constant 0.797884583 : f32
      %23 = vector.broadcast %cst_16 : f32 to vector<16x256xf32>
      %24 = arith.mulf %23, %22 : vector<16x256xf32>
      %25 = math.tanh %24 : vector<16x256xf32>
      %cst_17 = arith.constant 1.000000e+00 : f32
      %26 = vector.broadcast %cst_17 : f32 to vector<16x256xf32>
      %27 = arith.addf %26, %25 : vector<16x256xf32>
      %28 = arith.mulf %17, %27 : vector<16x256xf32>
      %29 = arith.truncf %28 : vector<16x256xf32> to vector<16x256xbf16>
      %c0_18 = arith.constant 0 : index
      %c0_19 = arith.constant 0 : index
      %30 = vector.load %arg6[%c0_18, %c0_19] : memref<16x256xbf16, #tpu.memory_space<vmem>>, vector<16x256xbf16>
      tpu.vector_store %arg6[%c0_18, %c0_19], %29 {strides = array<i32>} : memref<16x256xbf16, #tpu.memory_space<vmem>>, vector<16x256xbf16>,
    } else {
    }
    return
  }
  func.func @transform_0(%arg0: i32, %arg1: i32, %arg2: i32) -> (i32, i32) {
    %c0_i32 = arith.constant 0 : i32
    return %arg0, %arg2 : i32, i32
  }
  func.func @transform_1(%arg0: i32, %arg1: i32, %arg2: i32) -> (i32, i32) {
    %c0_i32 = arith.constant 0 : i32
    return %arg2, %arg1 : i32, i32
  }
  func.func @transform_2(%arg0: i32, %arg1: i32, %arg2: i32) -> (i32, i32) {
    %c0_i32 = arith.constant 0 : i32
    %c0_i32_0 = arith.constant 0 : i32
    return %c0_i32, %arg1 : i32, i32
  }
  func.func @transform_3(%arg0: i32, %arg1: i32, %arg2: i32) -> (i32, i32) {
    %c0_i32 = arith.constant 0 : i32
    return %arg0, %arg1 : i32, i32
  }
}

module attributes {stable_mosaic.version = 11 : i64} {
  func.func @_matmul_ln_kernel(%arg0: i32, %arg1: i32, %arg2: i32, %arg3: memref<16x256xbf16, #tpu.memory_space<vmem>>, %arg4: memref<256x128xbf16, #tpu.memory_space<vmem>>, %arg5: memref<1x128xf32, #tpu.memory_space<vmem>>, %arg6: memref<16x128xbf16, #tpu.memory_space<vmem>>, %arg7: memref<1x128xf32, #tpu.memory_space<vmem>>, %arg8: memref<1x128xf32, #tpu.memory_space<vmem>>, %arg9: memref<16x128xbf16, #tpu.memory_space<vmem>>, %arg10: memref<16x128xf32, #tpu.memory_space<vmem>>) attributes {dimension_semantics = [#tpu.dimension_semantics<parallel>, #tpu.dimension_semantics<parallel>, #tpu.dimension_semantics<arbitrary>], iteration_bounds = array<i64: 1, 1, 1>, scalar_prefetch = 0 : i64, scratch_operands = 1 : i64, tpu.core_type = #tpu.core_type<tc>, window_params = [{transform_indices = @transform_0, window_bounds = array<i64: 16, 256>}, {transform_indices = @transform_1, window_bounds = array<i64: 256, 128>}, {transform_indices = @transform_2, window_bounds = array<i64: 1, 128>}, {transform_indices = @transform_3, window_bounds = array<i64: 16, 128>}, {transform_indices = @transform_4, window_bounds = array<i64: 1, 128>}, {transform_indices = @transform_5, window_bounds = array<i64: 1, 128>}, {transform_indices = @transform_6, window_bounds = array<i64: 16, 128>}]} {
    %c0_i32 = arith.constant 0 : i32
    %0 = arith.cmpi eq, %arg2, %c0_i32 : i32
    %1 = arith.extui %0 : i1 to i32
    %c0_i32_0 = arith.constant 0 : i32
    %2 = arith.cmpi ne, %1, %c0_i32_0 : i32
    scf.if %2 {
      %cst_10 = arith.constant 0.000000e+00 : f32
      %12 = vector.broadcast %cst_10 : f32 to vector<16x128xf32>
      %c0_11 = arith.constant 0 : index
      %c0_12 = arith.constant 0 : index
      %13 = vector.load %arg10[%c0_11, %c0_12] : memref<16x128xf32, #tpu.memory_space<vmem>>, vector<16x128xf32>
      tpu.vector_store %arg10[%c0_11, %c0_12], %12 {strides = array<i32>} : memref<16x128xf32, #tpu.memory_space<vmem>>, vector<16x128xf32>,
    } else {
    }
    %c0 = arith.constant 0 : index
    %c0_1 = arith.constant 0 : index
    %3 = vector.load %arg10[%c0, %c0_1] : memref<16x128xf32, #tpu.memory_space<vmem>>, vector<16x128xf32>
    %c0_2 = arith.constant 0 : index
    %c0_3 = arith.constant 0 : index
    %4 = vector.load %arg3[%c0_2, %c0_3] : memref<16x256xbf16, #tpu.memory_space<vmem>>, vector<16x256xbf16>
    %c0_4 = arith.constant 0 : index
    %c0_5 = arith.constant 0 : index
    %5 = vector.load %arg4[%c0_4, %c0_5] : memref<256x128xbf16, #tpu.memory_space<vmem>>, vector<256x128xbf16>
    %cst = arith.constant dense<0.000000e+00> : vector<16x128xf32>
    %6 = tpu.matmul %4, %5, %cst {dimension_numbers = #tpu.dot_dimension_numbers<[1], [0], [0], [1], [0, 0, 1, 1], [], []>} : vector<16x256xbf16>, vector<256x128xbf16>, vector<16x128xf32> -> vector<16x128xf32>
    %7 = arith.addf %3, %6 : vector<16x128xf32>
    %c0_6 = arith.constant 0 : index
    %c0_7 = arith.constant 0 : index
    %8 = vector.load %arg10[%c0_6, %c0_7] : memref<16x128xf32, #tpu.memory_space<vmem>>, vector<16x128xf32>
    tpu.vector_store %arg10[%c0_6, %c0_7], %7 {strides = array<i32>} : memref<16x128xf32, #tpu.memory_space<vmem>>, vector<16x128xf32>,
    %c0_i32_8 = arith.constant 0 : i32
    %9 = arith.cmpi eq, %arg2, %c0_i32_8 : i32
    %10 = arith.extui %9 : i1 to i32
    %c0_i32_9 = arith.constant 0 : i32
    %11 = arith.cmpi ne, %10, %c0_i32_9 : i32
    scf.if %11 {
      %c0_10 = arith.constant 0 : index
      %c0_11 = arith.constant 0 : index
      %12 = vector.load %arg10[%c0_10, %c0_11] : memref<16x128xf32, #tpu.memory_space<vmem>>, vector<16x128xf32>
      %c0_12 = arith.constant 0 : index
      %c0_13 = arith.constant 0 : index
      %13 = vector.load %arg5[%c0_12, %c0_13] : memref<1x128xf32, #tpu.memory_space<vmem>>, vector<1x128xf32>
      %14 = vector.broadcast %13 : vector<1x128xf32> to vector<16x128xf32>
      %15 = arith.addf %12, %14 : vector<16x128xf32>
      %c0_14 = arith.constant 0 : index
      %c0_15 = arith.constant 0 : index
      %16 = vector.load %arg6[%c0_14, %c0_15] : memref<16x128xbf16, #tpu.memory_space<vmem>>, vector<16x128xbf16>
      %17 = arith.extf %16 : vector<16x128xbf16> to vector<16x128xf32>
      %18 = arith.addf %15, %17 : vector<16x128xf32>
      %cst_16 = arith.constant dense<0.000000e+00> : vector<16xf32>
      %19 = vector.multi_reduction <add>, %18, %cst_16 [1] : vector<16x128xf32> to vector<16xf32>
      %20 = vector.shape_cast %19 : vector<16xf32> to vector<16x1xf32>
      %cst_17 = arith.constant 1.280000e+02 : f32
      %21 = vector.broadcast %cst_17 : f32 to vector<16x1xf32>
      %22 = arith.divf %20, %21 : vector<16x1xf32>
      %23 = vector.broadcast %22 : vector<16x1xf32> to vector<16x128xf32>
      %24 = arith.subf %18, %23 : vector<16x128xf32>
      %25 = arith.mulf %24, %24 : vector<16x128xf32>
      %cst_18 = arith.constant dense<0.000000e+00> : vector<16xf32>
      %26 = vector.multi_reduction <add>, %25, %cst_18 [1] : vector<16x128xf32> to vector<16xf32>
      %27 = vector.shape_cast %26 : vector<16xf32> to vector<16x1xf32>
      %cst_19 = arith.constant 1.280000e+02 : f32
      %28 = vector.broadcast %cst_19 : f32 to vector<16x1xf32>
      %29 = arith.divf %27, %28 : vector<16x1xf32>
      %cst_20 = arith.constant 9.99999996E-13 : f32
      %30 = vector.broadcast %cst_20 : f32 to vector<16x1xf32>
      %31 = arith.addf %29, %30 : vector<16x1xf32>
      %32 = math.rsqrt %31 : vector<16x1xf32>
      %33 = vector.broadcast %32 : vector<16x1xf32> to vector<16x128xf32>
      %34 = arith.mulf %24, %33 : vector<16x128xf32>
      %c0_21 = arith.constant 0 : index
      %c0_22 = arith.constant 0 : index
      %35 = vector.load %arg7[%c0_21, %c0_22] : memref<1x128xf32, #tpu.memory_space<vmem>>, vector<1x128xf32>
      %36 = vector.broadcast %35 : vector<1x128xf32> to vector<16x128xf32>
      %37 = arith.mulf %34, %36 : vector<16x128xf32>
      %c0_23 = arith.constant 0 : index
      %c0_24 = arith.constant 0 : index
      %38 = vector.load %arg8[%c0_23, %c0_24] : memref<1x128xf32, #tpu.memory_space<vmem>>, vector<1x128xf32>
      %39 = vector.broadcast %38 : vector<1x128xf32> to vector<16x128xf32>
      %40 = arith.addf %37, %39 : vector<16x128xf32>
      %41 = arith.truncf %40 : vector<16x128xf32> to vector<16x128xbf16>
      %c0_25 = arith.constant 0 : index
      %c0_26 = arith.constant 0 : index
      %42 = vector.load %arg9[%c0_25, %c0_26] : memref<16x128xbf16, #tpu.memory_space<vmem>>, vector<16x128xbf16>
      tpu.vector_store %arg9[%c0_25, %c0_26], %41 {strides = array<i32>} : memref<16x128xbf16, #tpu.memory_space<vmem>>, vector<16x128xbf16>,
    } else {
    }
    return
  }
  func.func @transform_0(%arg0: i32, %arg1: i32, %arg2: i32) -> (i32, i32) {
    %c0_i32 = arith.constant 0 : i32
    return %arg0, %arg2 : i32, i32
  }
  func.func @transform_1(%arg0: i32, %arg1: i32, %arg2: i32) -> (i32, i32) {
    %c0_i32 = arith.constant 0 : i32
    return %arg2, %arg1 : i32, i32
  }
  func.func @transform_2(%arg0: i32, %arg1: i32, %arg2: i32) -> (i32, i32) {
    %c0_i32 = arith.constant 0 : i32
    %c0_i32_0 = arith.constant 0 : i32
    return %c0_i32, %arg1 : i32, i32
  }
  func.func @transform_3(%arg0: i32, %arg1: i32, %arg2: i32) -> (i32, i32) {
    %c0_i32 = arith.constant 0 : i32
    return %arg0, %arg1 : i32, i32
  }
  func.func @transform_4(%arg0: i32, %arg1: i32, %arg2: i32) -> (i32, i32) {
    %c0_i32 = arith.constant 0 : i32
    %c0_i32_0 = arith.constant 0 : i32
    return %c0_i32, %arg1 : i32, i32
  }
  func.func @transform_5(%arg0: i32, %arg1: i32, %arg2: i32) -> (i32, i32) {
    %c0_i32 = arith.constant 0 : i32
    %c0_i32_0 = arith.constant 0 : i32
    return %c0_i32, %arg1 : i32, i32
  }
  func.func @transform_6(%arg0: i32, %arg1: i32, %arg2: i32) -> (i32, i32) {
    %c0_i32 = arith.constant 0 : i32
    return %arg0, %arg1 : i32, i32
  }
}

module attributes {stable_mosaic.version = 11 : i64} {
  func.func @kernel(%arg0: i32, %arg1: memref<8x128xbf16, #tpu.memory_space<vmem>>, %arg2: memref<128x128xbf16, #tpu.memory_space<vmem>>, %arg3: memref<1x128xf32, #tpu.memory_space<vmem>>, %arg4: memref<8x128xf32, #tpu.memory_space<vmem>>) attributes {dimension_semantics = [#tpu.dimension_semantics<parallel>], iteration_bounds = array<i64: 2>, scalar_prefetch = 0 : i64, scratch_operands = 0 : i64, tpu.core_type = #tpu.core_type<tc>, window_params = [{transform_indices = @transform_0, window_bounds = array<i64: 8, 128>}, {pipeline_mode = #tpu.pipeline_mode<synchronous>, transform_indices = @transform_1, window_bounds = array<i64: 128, 128>}, {pipeline_mode = #tpu.pipeline_mode<synchronous>, transform_indices = @transform_2, window_bounds = array<i64: 1, 128>}, {transform_indices = @transform_3, window_bounds = array<i64: 8, 128>}]} {
    %c0 = arith.constant 0 : index
    %c0_0 = arith.constant 0 : index
    %0 = vector.load %arg1[%c0, %c0_0] : memref<8x128xbf16, #tpu.memory_space<vmem>>, vector<8x128xbf16>
    %c0_1 = arith.constant 0 : index
    %c0_2 = arith.constant 0 : index
    %1 = vector.load %arg2[%c0_1, %c0_2] : memref<128x128xbf16, #tpu.memory_space<vmem>>, vector<128x128xbf16>
    %cst = arith.constant dense<0.000000e+00> : vector<8x128xf32>
    %2 = tpu.matmul %0, %1, %cst {dimension_numbers = #tpu.dot_dimension_numbers<[1], [0], [0], [1], [0, 0, 1, 1], [], []>} : vector<8x128xbf16>, vector<128x128xbf16>, vector<8x128xf32> -> vector<8x128xf32>
    %c0_3 = arith.constant 0 : index
    %c0_4 = arith.constant 0 : index
    %3 = vector.load %arg3[%c0_3, %c0_4] : memref<1x128xf32, #tpu.memory_space<vmem>>, vector<1x128xf32>
    %4 = vector.broadcast %3 : vector<1x128xf32> to vector<8x128xf32>
    %5 = arith.addf %2, %4 : vector<8x128xf32>
    %cst_5 = arith.constant dense<0xFF800000> : vector<128xf32>
    %6 = vector.multi_reduction <maximumf>, %5, %cst_5 [0] : vector<8x128xf32> to vector<128xf32>
    %7 = vector.shape_cast %6 : vector<128xf32> to vector<1x128xf32>
    %8 = vector.broadcast %7 : vector<1x128xf32> to vector<8x128xf32>
    %9 = arith.subf %5, %8 : vector<8x128xf32>
    %10 = math.exp %9 : vector<8x128xf32>
    %cst_6 = arith.constant dense<0.000000e+00> : vector<128xf32>
    %11 = vector.multi_reduction <add>, %10, %cst_6 [0] : vector<8x128xf32> to vector<128xf32>
    %12 = vector.shape_cast %11 : vector<128xf32> to vector<1x128xf32>
    %13 = vector.broadcast %12 : vector<1x128xf32> to vector<8x128xf32>
    %14 = arith.divf %10, %13 : vector<8x128xf32>
    %c0_7 = arith.constant 0 : index
    %c0_8 = arith.constant 0 : index
    %15 = vector.load %arg4[%c0_7, %c0_8] : memref<8x128xf32, #tpu.memory_space<vmem>>, vector<8x128xf32>
    tpu.vector_store %arg4[%c0_7, %c0_8], %14 {strides = array<i32>} : memref<8x128xf32, #tpu.memory_space<vmem>>, vector<8x128xf32>,
    return
  }
  func.func @transform_0(%arg0: i32) -> (i32, i32) {
    %c0_i32 = arith.constant 0 : i32
    %c0_i32_0 = arith.constant 0 : i32
    return %arg0, %c0_i32 : i32, i32
  }
  func.func @transform_1(%arg0: i32) -> (i32, i32) {
    %c0_i32 = arith.constant 0 : i32
    %c0_i32_0 = arith.constant 0 : i32
    %c0_i32_1 = arith.constant 0 : i32
    return %c0_i32, %c0_i32_0 : i32, i32
  }
  func.func @transform_2(%arg0: i32) -> (i32, i32) {
    %c0_i32 = arith.constant 0 : i32
    %c0_i32_0 = arith.constant 0 : i32
    %c0_i32_1 = arith.constant 0 : i32
    return %c0_i32, %c0_i32_0 : i32, i32
  }
  func.func @transform_3(%arg0: i32) -> (i32, i32) {
    %c0_i32 = arith.constant 0 : i32
    %c0_i32_0 = arith.constant 0 : i32
    return %arg0, %c0_i32 : i32, i32
  }
}

module attributes {stable_mosaic.version = 11 : i64} {
  func.func @_matmul_kernel(%arg0: i32, %arg1: i32, %arg2: i32, %arg3: memref<16x128xbf16, #tpu.memory_space<vmem>>, %arg4: memref<128x256xbf16, #tpu.memory_space<vmem>>, %arg5: memref<1x256xf32, #tpu.memory_space<vmem>>, %arg6: memref<16x256xbf16, #tpu.memory_space<vmem>>, %arg7: memref<16x256xf32, #tpu.memory_space<vmem>>) attributes {dimension_semantics = [#tpu.dimension_semantics<parallel>, #tpu.dimension_semantics<parallel>, #tpu.dimension_semantics<arbitrary>], iteration_bounds = array<i64: 1, 1, 1>, scalar_prefetch = 0 : i64, scratch_operands = 1 : i64, tpu.core_type = #tpu.core_type<tc>, window_params = [{transform_indices = @transform_0, window_bounds = array<i64: 16, 128>}, {transform_indices = @transform_1, window_bounds = array<i64: 128, 256>}, {transform_indices = @transform_2, window_bounds = array<i64: 1, 256>}, {transform_indices = @transform_3, window_bounds = array<i64: 16, 256>}]} {
    %c0_i32 = arith.constant 0 : i32
    %0 = arith.cmpi eq, %arg2, %c0_i32 : i32
    %1 = arith.extui %0 : i1 to i32
    %c0_i32_0 = arith.constant 0 : i32
    %2 = arith.cmpi ne, %1, %c0_i32_0 : i32
    scf.if %2 {
      %cst_10 = arith.constant 0.000000e+00 : f32
      %12 = vector.broadcast %cst_10 : f32 to vector<16x256xf32>
      %c0_11 = arith.constant 0 : index
      %c0_12 = arith.constant 0 : index
      %13 = vector.load %arg7[%c0_11, %c0_12] : memref<16x256xf32, #tpu.memory_space<vmem>>, vector<16x256xf32>
      tpu.vector_store %arg7[%c0_11, %c0_12], %12 {strides = array<i32>} : memref<16x256xf32, #tpu.memory_space<vmem>>, vector<16x256xf32>,
    } else {
    }
    %c0 = arith.constant 0 : index
    %c0_1 = arith.constant 0 : index
    %3 = vector.load %arg7[%c0, %c0_1] : memref<16x256xf32, #tpu.memory_space<vmem>>, vector<16x256xf32>
    %c0_2 = arith.constant 0 : index
    %c0_3 = arith.constant 0 : index
    %4 = vector.load %arg3[%c0_2, %c0_3] : memref<16x128xbf16, #tpu.memory_space<vmem>>, vector<16x128xbf16>
    %c0_4 = arith.constant 0 : index
    %c0_5 = arith.constant 0 : index
    %5 = vector.load %arg4[%c0_4, %c0_5] : memref<128x256xbf16, #tpu.memory_space<vmem>>, vector<128x256xbf16>
    %cst = arith.constant dense<0.000000e+00> : vector<16x256xf32>
    %6 = tpu.matmul %4, %5, %cst {dimension_numbers = #tpu.dot_dimension_numbers<[1], [0], [0], [1], [0, 0, 1, 1], [], []>} : vector<16x128xbf16>, vector<128x256xbf16>, vector<16x256xf32> -> vector<16x256xf32>
    %7 = arith.addf %3, %6 : vector<16x256xf32>
    %c0_6 = arith.constant 0 : index
    %c0_7 = arith.constant 0 : index
    %8 = vector.load %arg7[%c0_6, %c0_7] : memref<16x256xf32, #tpu.memory_space<vmem>>, vector<16x256xf32>
    tpu.vector_store %arg7[%c0_6, %c0_7], %7 {strides = array<i32>} : memref<16x256xf32, #tpu.memory_space<vmem>>, vector<16x256xf32>,
    %c0_i32_8 = arith.constant 0 : i32
    %9 = arith.cmpi eq, %arg2, %c0_i32_8 : i32
    %10 = arith.extui %9 : i1 to i32
    %c0_i32_9 = arith.constant 0 : i32
    %11 = arith.cmpi ne, %10, %c0_i32_9 : i32
    scf.if %11 {
      %c0_10 = arith.constant 0 : index
      %c0_11 = arith.constant 0 : index
      %12 = vector.load %arg7[%c0_10, %c0_11] : memref<16x256xf32, #tpu.memory_space<vmem>>, vector<16x256xf32>
      %c0_12 = arith.constant 0 : index
      %c0_13 = arith.constant 0 : index
      %13 = vector.load %arg5[%c0_12, %c0_13] : memref<1x256xf32, #tpu.memory_space<vmem>>, vector<1x256xf32>
      %14 = vector.broadcast %13 : vector<1x256xf32> to vector<16x256xf32>
      %15 = arith.addf %12, %14 : vector<16x256xf32>
      %cst_14 = arith.constant 5.000000e-01 : f32
      %16 = vector.broadcast %cst_14 : f32 to vector<16x256xf32>
      %17 = arith.mulf %16, %15 : vector<16x256xf32>
      %cst_15 = arith.constant 4.471500e-02 : f32
      %18 = vector.broadcast %cst_15 : f32 to vector<16x256xf32>
      %19 = arith.mulf %18, %15 : vector<16x256xf32>
      %20 = arith.mulf %19, %15 : vector<16x256xf32>
      %21 = arith.mulf %20, %15 : vector<16x256xf32>
      %22 = arith.addf %15, %21 : vector<16x256xf32>
      %cst_16 = arith.constant 0.797884583 : f32
      %23 = vector.broadcast %cst_16 : f32 to vector<16x256xf32>
      %24 = arith.mulf %23, %22 : vector<16x256xf32>
      %25 = math.tanh %24 : vector<16x256xf32>
      %cst_17 = arith.constant 1.000000e+00 : f32
      %26 = vector.broadcast %cst_17 : f32 to vector<16x256xf32>
      %27 = arith.addf %26, %25 : vector<16x256xf32>
      %28 = arith.mulf %17, %27 : vector<16x256xf32>
      %29 = arith.truncf %28 : vector<16x256xf32> to vector<16x256xbf16>
      %c0_18 = arith.constant 0 : index
      %c0_19 = arith.constant 0 : index
      %30 = vector.load %arg6[%c0_18, %c0_19] : memref<16x256xbf16, #tpu.memory_space<vmem>>, vector<16x256xbf16>
      tpu.vector_store %arg6[%c0_18, %c0_19], %29 {strides = array<i32>} : memref<16x256xbf16, #tpu.memory_space<vmem>>, vector<16x256xbf16>,
    } else {
    }
    return
  }
  func.func @transform_0(%arg0: i32, %arg1: i32, %arg2: i32) -> (i32, i32) {
    %c0_i32 = arith.constant 0 : i32
    return %arg0, %arg2 : i32, i32
  }
  func.func @transform_1(%arg0: i32, %arg1: i32, %arg2: i32) -> (i32, i32) {
    %c0_i32 = arith.constant 0 : i32
    return %arg2, %arg1 : i32, i32
  }
  func.func @transform_2(%arg0: i32, %arg1: i32, %arg2: i32) -> (i32, i32) {
    %c0_i32 = arith.constant 0 : i32
    %c0_i32_0 = arith.constant 0 : i32
    return %c0_i32, %arg1 : i32, i32
  }
  func.func @transform_3(%arg0: i32, %arg1: i32, %arg2: i32) -> (i32, i32) {
    %c0_i32 = arith.constant 0 : i32
    return %arg0, %arg1 : i32, i32
  }
}

</mosaic_0001>

<bundles_post_ra>
// kernel: bert_nn_forward.12
= control target key start
LH: loop header
LB: loop body
LE: loop exit
PB: predicated region body
PF: predicated region fallthrough
CT: control target
= control target key end

     0   :  { %v103_v3 = vmov 128.0   ;;  %s136_s0 = inlined_call_operand.vmem [shape: bf16[16,128], index: 0, kind: input, shape index: {}]   ;;  %s137_s1 = inlined_call_operand.vmem [shape: f32[1,128], index: 1, kind: input, shape index: {}]   ;;  %s138_s2 = inlined_call_operand.vmem [shape: f32[1,128], index: 2, kind: input, shape index: {}]   ;;  %s139_s3 = inlined_call_operand.vmem [shape: bf16[16,128], index: 3, kind: output, shape index: {}]  }
   0x1   :  { %v86_v0 = vld [vmem:[%s136_s0] sm:$0xff]   ;;  %97 = vrcp.f32 %v103_v3 }
   0x2   :  { %v87_v1 = vunpack.c.l.bf16 %v86_v0  ;;  %v88_v2 = vunpack.c.h.bf16 %v86_v0  ;;  %v95_v36 = vld [vmem:[%s137_s1] ss:$0 sm:$0xff] }
   0x3   :  { %v96_v40 = vld [vmem:[%s138_s2] ss:$0 sm:$0xff] }
   0x4   :  { %18 = vadd.xlane.f32.xlu0 %v87_v1 }
   0x7   :  { %v98_v4 = vpop.eup %97 }
   0x8   :  { %v23_v5 = vmul.f32 128.0, %v98_v4  ;;  %vm27_vm0 = vweird.f32 %v98_v4 }
   0xa   :  { %v24_v6 = vsub.f32 1.0, %v23_v5 }
   0xc   :  { %20 = vadd.xlane.f32.xlu0 %v88_v2  ;;  %v25_v7 = vmul.f32 %v98_v4, %v24_v6 }
   0xe   :  { %v26_v8 = vadd.f32 %v98_v4, %v25_v7 }
  0x10   :  { %v28_v9 = vsel %vm27_vm0, %v98_v4, %v26_v8 }
  0x77   :  { %v19_v10 = vpop.xlane.xlu0 %18 }
  0x78   :  { %v29_v11 = vmul.f32 %v28_v9, %v19_v10 }
  0x7a   :  { %v31_v12 = vsub.f32 %v87_v1, %v29_v11 }
  0x7c   :  { %v33_v13 = vmul.f32 %v31_v12, %v31_v12 }
  0x7e   :  { %35 = vadd.xlane.f32.xlu1 %v33_v13 }
  0x7f   :  { %v21_v14 = vpop.xlane.xlu0 %20 }
  0x80   :  { %v30_v15 = vmul.f32 %v28_v9, %v21_v14 }
  0x82   :  { %v32_v16 = vsub.f32 %v88_v2, %v30_v15 }
  0x84   :  { %v34_v17 = vmul.f32 %v32_v16, %v32_v16 }
  0x86   :  { %37 = vadd.xlane.f32.xlu1 %v34_v17 }
  0xf1   :  { %v36_v18 = vpop.xlane.xlu1 %35 }
  0xf2   :  { %v39_v19 = vmul.f32 %v36_v18, %v28_v9 }
  0xf4   :  { %v41_v20 = vadd.f32 1e-12, %v39_v19 }
  0xf6   :  { %99 = vrsqrt.f32 %v41_v20  ;;  %vm49_vm2 = vweird.f32 %v41_v20 }
  0xf9   :  { %v38_v21 = vpop.xlane.xlu1 %37 }
  0xfa   :  { %v40_v22 = vmul.f32 %v38_v21, %v28_v9 }
  0xfc   :  { %v100_v23 = vpop.eup %99  ;;  %v42_v24 = vadd.f32 1e-12, %v40_v22 }
  0xfd   :  { %v44_v25 = vmul.f32 %v100_v23, %v41_v20  ;;  %vm50_vm1 = vweird.f32 %v100_v23 }
  0xfe   :  { %101 = vrsqrt.f32 %v42_v24  ;;  %vm51_vm3 = vmor %vm49_vm2, %vm50_vm1  ;;  %vm59_vm5 = vweird.f32 %v42_v24 }
  0xff   :  { %v45_v26 = vmul.f32 %v100_v23, %v44_v25 }
 0x101   :  { %v46_v27 = vmul.f32 0.5, %v45_v26 }
 0x103   :  { %v47_v28 = vsub.f32 1.5, %v46_v27 }
 0x104   :  { %v102_v29 = vpop.eup %101 }
 0x105   :  { %v48_v30 = vmul.f32 %v100_v23, %v47_v28  ;;  %v54_v31 = vmul.f32 %v102_v29, %v42_v24  ;;  %vm60_vm4 = vweird.f32 %v102_v29 }
 0x106   :  { %vm61_vm6 = vmor %vm59_vm5, %vm60_vm4 }
 0x107   :  { %v55_v32 = vmul.f32 %v102_v29, %v54_v31  ;;  %v52_v33 = vsel %vm51_vm3, %v100_v23, %v48_v30 }
 0x108   :  { %v63_v37 = vmul.f32 %v52_v33, %v31_v12 }
 0x109   :  { %v56_v34 = vmul.f32 0.5, %v55_v32 }
 0x10a   :  { %v69_v41 = vmul.f32 %v95_v36, %v63_v37 }
 0x10b   :  { %v57_v35 = vsub.f32 1.5, %v56_v34 }
 0x10c   :  { %v75_v44 = vadd.f32 %v96_v40, %v69_v41 }
 0x10d   :  { %v58_v38 = vmul.f32 %v102_v29, %v57_v35 }
 0x10f   :  { %v62_v39 = vsel %vm61_vm6, %v102_v29, %v58_v38 }
 0x110   :  { %v64_v42 = vmul.f32 %v62_v39, %v32_v16 }
 0x112   :  { %v70_v43 = vmul.f32 %v95_v36, %v64_v42 }
 0x114   :  { %v76_v45 = vadd.f32 %v96_v40, %v70_v43 }
 0x116   :  { %v92_v46 = vpack.c.bf16 %v76_v45, %v75_v44 }
 0x118   :  { %93 = vst [vmem:[%s139_s3] sm:$0xff] %v92_v46  }

// kernel: bert_nn_forward.13
= control target key start
LH: loop header
LB: loop body
LE: loop exit
PB: predicated region body
PF: predicated region fallthrough
CT: control target
= control target key end

     0   :  { %8 = vsyncpa [#allocation4], 0  ;;  %s458_s15 = smov [#allocation3]   ;;  %s459_s17 = smov 192   ;;  %s502_s0 = inlined_call_operand.vmem [shape: bf16[16,128], index: 0, kind: input, shape index: {}]   ;;  %s503_s1 = inlined_call_operand.hbm [shape: bf16[128,384], index: 1, kind: input, shape index: {}]   ;;  %s504_s2 = inlined_call_operand.vmem [shape: f32[1,384], index: 2, kind: input, shape index: {}]   ;;  %s505_s3 = inlined_call_operand.vmem [shape: bf16[16,384], index: 3, kind: output, shape index: {}]  }
   0x1   :  { %s15_s14 = sshll.u32 %s503_s1, 4  ;;  %s17_s16 = sshll.u32 %s458_s15, 4  ;;  %s16_s14 = int_to_ptr.hbm [resolvable:$true] %s15_s14  ;;  %s18_s16 = int_to_ptr.vmem [resolvable:$true] %s17_s16 }
   0x2   :  { %s460_s18 = smov 12  }
   0x3   :  { %23 = dma.hbm_to_vmem [thread:$0]  %s16_s14, 3072, %s18_s16, [#allocation4], %s459_s17, %s459_s17, %s460_s18  }
   0x4   :  { %456 = dma.done.wait [#allocation4], 3072  }
   0x5   :  { %457 = vsyncadd [#allocation4], 4294964224  ;;  %v394_v0 = vld [vmem:[#allocation3 + $0xa8] sm:$0xf]  ;;  %v427_v1 = vld [vmem:[#allocation3 + $0xb0] sm:$0xf0] }
   0x6   :  { %v426_v2 = vld [vmem:[#allocation3 + $0xac] sm:$0xf]  ;;  %v395_v3 = vor.u32 %v427_v1, %v394_v0  ;;  %v396_v4 = vld [vmem:[#allocation3 + $0xb4] sm:$0xf0]  ;;  %v402_v5 = vld [vmem:[#allocation3 + $0xb0] sm:$0xf] }
   0x7   :  { %v428_v6 = vld [vmem:[#allocation3 + $0xb8] sm:$0xf0]  ;;  %v399_v7 = vor.u32 %v426_v2, %v396_v4  ;;  %v382_v9 = vld [vmem:[#allocation3 + $0x90] sm:$0xf]  ;;  %v423_v11 = vld [vmem:[#allocation3 + $0x94] sm:$0xf] }
   0x8   :  { %v403_v8 = vor.u32 %v428_v6, %v402_v5  ;;  %v424_v10 = vld [vmem:[#allocation3 + $0x98] sm:$0xf0]  ;;  %214 = vmatpush.bf16.msra.mxu0 %v395_v3  ;;  %v384_v13 = vld [vmem:[#allocation3 + $0x9c] sm:$0xf0]  ;;  %v390_v14 = vld [vmem:[#allocation3 + $0x98] sm:$0xf] }
   0x9   :  { %v383_v12 = vor.u32 %v424_v10, %v382_v9  ;;  %v425_v15 = vld [vmem:[#allocation3 + $0xa0] sm:$0xf0]  ;;  %228 = vmatpush.bf16.msra.mxu1 %v399_v7  ;;  %v387_v16 = vor.u32 %v423_v11, %v384_v13  ;;  %v370_v18 = vld [vmem:[#allocation3 + $0x78] sm:$0xf]  ;;  %v420_v20 = vld [vmem:[#allocation3 + $0x7c] sm:$0xf] }
   0xa   :  { %242 = vmatpush.bf16.msra.mxu2 %v403_v8  ;;  %v391_v17 = vor.u32 %v425_v15, %v390_v14  ;;  %v421_v19 = vld [vmem:[#allocation3 + $0x80] sm:$0xf0]  ;;  %v372_v21 = vld [vmem:[#allocation3 + $0x84] sm:$0xf0]  ;;  %v378_v22 = vld [vmem:[#allocation3 + $0x80] sm:$0xf] }
   0xb   :  { %v422_v23 = vld [vmem:[#allocation3 + $0x88] sm:$0xf0]  ;;  %v371_v24 = vor.u32 %v421_v19, %v370_v18  ;;  %v375_v25 = vor.u32 %v420_v20, %v372_v21  ;;  %v358_v27 = vld [vmem:[#allocation3 + $0x60] sm:$0xf]  ;;  %v417_v29 = vld [vmem:[#allocation3 + $0x64] sm:$0xf] }
   0xc   :  { %215 = vmatpush.bf16.msra.mxu0 %v383_v12  ;;  %v379_v26 = vor.u32 %v422_v23, %v378_v22  ;;  %v418_v28 = vld [vmem:[#allocation3 + $0x68] sm:$0xf0]  ;;  %v360_v30 = vld [vmem:[#allocation3 + $0x6c] sm:$0xf0]  ;;  %v366_v31 = vld [vmem:[#allocation3 + $0x68] sm:$0xf] }
   0xd   :  { %229 = vmatpush.bf16.msra.mxu1 %v387_v16  ;;  %v419_v32 = vld [vmem:[#allocation3 + $0x70] sm:$0xf0]  ;;  %v359_v33 = vor.u32 %v418_v28, %v358_v27  ;;  %v363_v34 = vor.u32 %v417_v29, %v360_v30  ;;  %v346_v36 = vld [vmem:[#allocation3 + $0x48] sm:$0xf]  ;;  %v414_v38 = vld [vmem:[#allocation3 + $0x4c] sm:$0xf] }
   0xe   :  { %243 = vmatpush.bf16.msra.mxu2 %v391_v17  ;;  %v367_v35 = vor.u32 %v419_v32, %v366_v31  ;;  %v415_v37 = vld [vmem:[#allocation3 + $0x50] sm:$0xf0]  ;;  %v348_v39 = vld [vmem:[#allocation3 + $0x54] sm:$0xf0]  ;;  %v354_v40 = vld [vmem:[#allocation3 + $0x50] sm:$0xf] }
   0xf   :  { %v416_v41 = vld [vmem:[#allocation3 + $0x58] sm:$0xf0]  ;;  %v347_v42 = vor.u32 %v415_v37, %v346_v36  ;;  %v351_v43 = vor.u32 %v414_v38, %v348_v39  ;;  %v334_v45 = vld [vmem:[#allocation3 + $0x30] sm:$0xf]  ;;  %v411_v47 = vld [vmem:[#allocation3 + $0x34] sm:$0xf] }
  0x10   :  { %216 = vmatpush.bf16.msra.mxu0 %v371_v24  ;;  %v355_v44 = vor.u32 %v416_v41, %v354_v40  ;;  %v412_v46 = vld [vmem:[#allocation3 + $0x38] sm:$0xf0]  ;;  %v336_v48 = vld [vmem:[#allocation3 + $0x3c] sm:$0xf0]  ;;  %v342_v49 = vld [vmem:[#allocation3 + $0x38] sm:$0xf] }
  0x11   :  { %230 = vmatpush.bf16.msra.mxu1 %v375_v25  ;;  %v413_v50 = vld [vmem:[#allocation3 + $0x40] sm:$0xf0]  ;;  %v335_v51 = vor.u32 %v412_v46, %v334_v45  ;;  %v339_v52 = vor.u32 %v411_v47, %v336_v48  ;;  %v322_v54 = vld [vmem:[#allocation3 + $0x18] sm:$0xf]  ;;  %v408_v56 = vld [vmem:[#allocation3 + $0x1c] sm:$0xf] }
  0x12   :  { %244 = vmatpush.bf16.msra.mxu2 %v379_v26  ;;  %v343_v53 = vor.u32 %v413_v50, %v342_v49  ;;  %v409_v55 = vld [vmem:[#allocation3 + $0x20] sm:$0xf0]  ;;  %v324_v57 = vld [vmem:[#allocation3 + $0x24] sm:$0xf0]  ;;  %v330_v58 = vld [vmem:[#allocation3 + $0x20] sm:$0xf] }
  0x13   :  { %v410_v59 = vld [vmem:[#allocation3 + $0x28] sm:$0xf0]  ;;  %v323_v60 = vor.u32 %v409_v55, %v322_v54  ;;  %v327_v61 = vor.u32 %v408_v56, %v324_v57  ;;  %v310_v63 = vld [vmem:[#allocation3] sm:$0xf]  ;;  %v405_v1 = vld [vmem:[#allocation3 + $0x4] sm:$0xf] }
  0x14   :  { %217 = vmatpush.bf16.msra.mxu0 %v359_v33  ;;  %v331_v62 = vor.u32 %v410_v59, %v330_v58  ;;  %v406_v0 = vld [vmem:[#allocation3 + $0x8] sm:$0xf0]  ;;  %v312_v2 = vld [vmem:[#allocation3 + $0xc] sm:$0xf0]  ;;  %v318_v3 = vld [vmem:[#allocation3 + $0x8] sm:$0xf] }
  0x15   :  { %231 = vmatpush.bf16.msra.mxu1 %v363_v34  ;;  %v407_v4 = vld [vmem:[#allocation3 + $0x10] sm:$0xf0]  ;;  %v311_v5 = vor.u32 %v406_v0, %v310_v63  ;;  %v315_v6 = vor.u32 %v405_v1, %v312_v2  ;;  %v404_v8 = vld [vmem:[%s502_s0] sm:$0xff] }
  0x16   :  { %245 = vmatpush.bf16.msra.mxu2 %v367_v35  ;;  %v319_v7 = vor.u32 %v407_v4, %v318_v3  ;;  %v277_v9 = vld [vmem:[%s504_s2] sm:$0x7] }
  0x17   :  { %v279_v10 = vperm.slane %v277_v9, 0  ;;  %v280_v11 = vperm.slane %v277_v9, 1  ;;  %v281_v17 = vperm.slane %v277_v9, 2 }
  0x18   :  { %218 = vmatpush.bf16.msra.mxu0 %v347_v42 }
  0x19   :  { %232 = vmatpush.bf16.msra.mxu1 %v351_v43 }
  0x1a   :  { %246 = vmatpush.bf16.msra.mxu2 %v355_v44 }
  0x1c   :  { %219 = vmatpush.bf16.msra.mxu0 %v335_v51 }
  0x1d   :  { %233 = vmatpush.bf16.msra.mxu1 %v339_v52 }
  0x1e   :  { %247 = vmatpush.bf16.msra.mxu2 %v343_v53 }
  0x20   :  { %220 = vmatpush.bf16.msra.mxu0 %v323_v60 }
  0x21   :  { %234 = vmatpush.bf16.msra.mxu1 %v327_v61 }
  0x22   :  { %248 = vmatpush.bf16.msra.mxu2 %v331_v62 }
  0x24   :  { %221 = vmatpush.bf16.msra.mxu0 %v311_v5 }
  0x25   :  { %235 = vmatpush.bf16.msra.mxu1 %v315_v6 }
  0x26   :  { %249 = vmatpush.bf16.msra.mxu2 %v319_v7 }
  0x27   :  { %222 = vmatmul.bf16.vlgmr.msra.gmra.mxu0 %v404_v8 }
  0x28   :  { %236 = vmatmul.bf16.vlgmr.msra.gmra.mxu1 %v404_v8 }
  0x29   :  { %250 = vmatmul.bf16.vlgmr.msra.gmra.mxu2 %v404_v8 }
  0xa4   :  { %v223_v12 = vpop.f32.mrf.mxu0 }
  0xa5   :  { %v285_v13 = vadd.f32 %v279_v10, %v223_v12  ;;  %v237_v14 = vpop.f32.mrf.mxu1 }
  0xa6   :  { %v286_v15 = vadd.f32 %v280_v11, %v237_v14 }
  0xa8   :  { %v291_v16 = vpack.c.bf16 %v286_v15, %v285_v13 }
  0xaa   :  { %295 = vst [vmem:[%s505_s3] sm:$0xff] %v291_v16 }
  0xac   :  { %v251_v18 = vpop.f32.mrf.mxu2  ;;  %v225_v20 = vpop.f32.mrf.mxu0 }
  0xad   :  { %v287_v19 = vadd.f32 %v281_v17, %v251_v18  ;;  %v288_v21 = vadd.f32 %v279_v10, %v225_v20  ;;  %v239_v22 = vpop.f32.mrf.mxu1 }
  0xae   :  { %v289_v24 = vadd.f32 %v280_v11, %v239_v22 }
  0xaf   :  { %v292_v23 = vpack.c.bf16 %v287_v19, %v287_v19 }
  0xb0   :  { %v293_v25 = vpack.c.bf16 %v289_v24, %v288_v21 }
  0xb1   :  { %296 = vst [vmem:[%s505_s3 + $0x8] sm:$0xf] %v292_v23 }
  0xb2   :  { %297 = vst [vmem:[%s505_s3 + $0xc] sm:$0xff] %v293_v25 }
  0xb4   :  { %v253_v26 = vpop.f32.mrf.mxu2 }
  0xb5   :  { %v290_v27 = vadd.f32 %v281_v17, %v253_v26 }
  0xb7   :  { %v294_v28 = vpack.c.bf16 %v290_v27, %v290_v27 }
  0xb9   :  { %298 = vst [vmem:[%s505_s3 + $0x14] sm:$0xf] %v294_v28 }
  0xba   :  { %303 = vsyncpa [#allocation4], 1 }

// kernel: bert_nn_forward.15
= control target key start
LH: loop header
LB: loop body
LE: loop exit
PB: predicated region body
PF: predicated region fallthrough
CT: control target
= control target key end

     0   :  { %11 = vsyncpa [#allocation4], 0  ;;  %s315_s24 = smov [#allocation3]   ;;  %s316_s26 = smov 64   ;;  %s375_s0 = inlined_call_operand.vmem [shape: bf16[16,128], index: 0, kind: input, shape index: {}]   ;;  %s376_s1 = inlined_call_operand.hbm [shape: bf16[128,128], index: 1, kind: input, shape index: {}]   ;;  %s377_s2 = inlined_call_operand.vmem [shape: f32[1,128], index: 2, kind: input, shape index: {}]   ;;  %s378_s3 = inlined_call_operand.vmem [shape: bf16[16,128], index: 3, kind: input, shape index: {}]   ;;  %s379_s4 = inlined_call_operand.vmem [shape: f32[1,128], index: 4, kind: input, shape index: {}]   ;;  %s380_s5 = inlined_call_operand.vmem [shape: f32[1,128], index: 5, kind: input, shape index: {}]   ;;  %s381_s6 = inlined_call_operand.vmem [shape: bf16[16,128], index: 6, kind: output, shape index: {}]  }
   0x1   :  { %s18_s23 = sshll.u32 %s376_s1, 4  ;;  %s20_s25 = sshll.u32 %s315_s24, 4  ;;  %s19_s23 = int_to_ptr.hbm [resolvable:$true] %s18_s23  ;;  %s21_s25 = int_to_ptr.vmem [resolvable:$true] %s20_s25 }
   0x2   :  { %s317_s27 = smov 4  }
   0x3   :  { %26 = dma.hbm_to_vmem [thread:$0]  %s19_s23, 1024, %s21_s25, [#allocation4], %s316_s26, %s316_s26, %s317_s27  }
   0x4   :  { %313 = dma.done.wait [#allocation4], 1024  }
   0x5   :  { %314 = vsyncadd [#allocation4], 4294966272  ;;  %v266_v0 = vld [vmem:[#allocation3 + $0x38] sm:$0xff]  ;;  %v265_v1 = vld [vmem:[#allocation3 + $0x30] sm:$0xff]  ;;  %v318_v19 = vmov 128.0  }
   0x6   :  { %119 = vmatpush.bf16.msra.mxu0 %v266_v0  ;;  %v264_v2 = vld [vmem:[#allocation3 + $0x28] sm:$0xff]  ;;  %v263_v3 = vld [vmem:[#allocation3 + $0x20] sm:$0xff]  ;;  %v262_v4 = vld [vmem:[#allocation3 + $0x18] sm:$0xff]  ;;  %283 = vrcp.f32 %v318_v19 }
   0x7   :  { %v261_v5 = vld [vmem:[#allocation3 + $0x10] sm:$0xff]  ;;  %v260_v6 = vld [vmem:[#allocation3 + $0x8] sm:$0xff]  ;;  %v259_v7 = vld [vmem:[#allocation3] sm:$0xff] }
   0x8   :  { %v258_v8 = vld [vmem:[%s375_s0] sm:$0xff] }
   0x9   :  { %v268_v9 = vld [vmem:[%s378_s3] sm:$0xff]  }
   0xa   :  { %120 = vmatpush.bf16.msra.mxu0 %v265_v1  ;;  %v280_v10 = vld [vmem:[%s377_s2] ss:$0 sm:$0xff]  ;;  %v269_v11 = vunpack.c.l.bf16 %v268_v9  ;;  %v270_v15 = vunpack.c.h.bf16 %v268_v9 }
   0xb   :  { %v281_v52 = vld [vmem:[%s379_s4] ss:$0 sm:$0xff] }
   0xc   :  { %v284_v20 = vpop.eup %283  ;;  %v282_v56 = vld [vmem:[%s380_s5] ss:$0 sm:$0xff] }
   0xd   :  { %v159_v21 = vmul.f32 128.0, %v284_v20  ;;  %vm163_vm0 = vweird.f32 %v284_v20 }
   0xe   :  { %121 = vmatpush.bf16.msra.mxu0 %v264_v2 }
   0xf   :  { %v160_v22 = vsub.f32 1.0, %v159_v21 }
  0x11   :  { %v161_v23 = vmul.f32 %v284_v20, %v160_v22 }
  0x12   :  { %122 = vmatpush.bf16.msra.mxu0 %v263_v3 }
  0x13   :  { %v162_v24 = vadd.f32 %v284_v20, %v161_v23 }
  0x15   :  { %v164_v25 = vsel %vm163_vm0, %v284_v20, %v162_v24 }
  0x16   :  { %123 = vmatpush.bf16.msra.mxu0 %v262_v4 }
  0x1a   :  { %124 = vmatpush.bf16.msra.mxu0 %v261_v5 }
  0x1e   :  { %125 = vmatpush.bf16.msra.mxu0 %v260_v6 }
  0x22   :  { %126 = vmatpush.bf16.msra.mxu0 %v259_v7 }
  0x25   :  { %127 = vmatmul.bf16.vlgmr.msra.gmra.mxu0 %v258_v8 }
  0xa2   :  { %v128_v12 = vpop.f32.mrf.mxu0 }
  0xa3   :  { %v146_v13 = vadd.f32 %v280_v10, %v128_v12 }
  0xa5   :  { %v152_v14 = vadd.f32 %v269_v11, %v146_v13 }
  0xa7   :  { %154 = vadd.xlane.f32.xlu0 %v152_v14 }
  0xaa   :  { %v130_v16 = vpop.f32.mrf.mxu0 }
  0xab   :  { %v147_v17 = vadd.f32 %v280_v10, %v130_v16 }
  0xad   :  { %v153_v18 = vadd.f32 %v270_v15, %v147_v17 }
  0xaf   :  { %156 = vadd.xlane.f32.xlu0 %v153_v18 }
 0x11a   :  { %v155_v26 = vpop.xlane.xlu0 %154 }
 0x11b   :  { %v165_v27 = vmul.f32 %v164_v25, %v155_v26 }
 0x11d   :  { %v167_v28 = vsub.f32 %v152_v14, %v165_v27 }
 0x11f   :  { %v169_v29 = vmul.f32 %v167_v28, %v167_v28 }
 0x121   :  { %171 = vadd.xlane.f32.xlu1 %v169_v29 }
 0x122   :  { %v157_v30 = vpop.xlane.xlu0 %156 }
 0x123   :  { %v166_v31 = vmul.f32 %v164_v25, %v157_v30 }
 0x125   :  { %v168_v32 = vsub.f32 %v153_v18, %v166_v31 }
 0x127   :  { %v170_v33 = vmul.f32 %v168_v32, %v168_v32 }
 0x129   :  { %173 = vadd.xlane.f32.xlu1 %v170_v33 }
 0x194   :  { %v172_v34 = vpop.xlane.xlu1 %171 }
 0x195   :  { %v175_v35 = vmul.f32 %v172_v34, %v164_v25 }
 0x197   :  { %v177_v36 = vadd.f32 1e-12, %v175_v35 }
 0x199   :  { %285 = vrsqrt.f32 %v177_v36  ;;  %vm185_vm2 = vweird.f32 %v177_v36 }
 0x19c   :  { %v174_v37 = vpop.xlane.xlu1 %173 }
 0x19d   :  { %v176_v38 = vmul.f32 %v174_v37, %v164_v25 }
 0x19f   :  { %v286_v39 = vpop.eup %285  ;;  %v178_v40 = vadd.f32 1e-12, %v176_v38 }
 0x1a0   :  { %v180_v41 = vmul.f32 %v286_v39, %v177_v36  ;;  %vm186_vm1 = vweird.f32 %v286_v39 }
 0x1a1   :  { %287 = vrsqrt.f32 %v178_v40  ;;  %vm187_vm3 = vmor %vm185_vm2, %vm186_vm1  ;;  %vm195_vm5 = vweird.f32 %v178_v40 }
 0x1a2   :  { %v181_v42 = vmul.f32 %v286_v39, %v180_v41 }
 0x1a4   :  { %v182_v43 = vmul.f32 0.5, %v181_v42 }
 0x1a6   :  { %v183_v44 = vsub.f32 1.5, %v182_v43 }
 0x1a7   :  { %v288_v45 = vpop.eup %287 }
 0x1a8   :  { %v184_v46 = vmul.f32 %v286_v39, %v183_v44  ;;  %v190_v47 = vmul.f32 %v288_v45, %v178_v40  ;;  %vm196_vm4 = vweird.f32 %v288_v45 }
 0x1a9   :  { %vm197_vm6 = vmor %vm195_vm5, %vm196_vm4 }
 0x1aa   :  { %v191_v48 = vmul.f32 %v288_v45, %v190_v47  ;;  %v188_v49 = vsel %vm187_vm3, %v286_v39, %v184_v46 }
 0x1ab   :  { %v199_v53 = vmul.f32 %v188_v49, %v167_v28 }
 0x1ac   :  { %v192_v50 = vmul.f32 0.5, %v191_v48 }
 0x1ad   :  { %v205_v57 = vmul.f32 %v281_v52, %v199_v53 }
 0x1ae   :  { %v193_v51 = vsub.f32 1.5, %v192_v50 }
 0x1af   :  { %v211_v60 = vadd.f32 %v282_v56, %v205_v57 }
 0x1b0   :  { %v194_v54 = vmul.f32 %v288_v45, %v193_v51 }
 0x1b2   :  { %v198_v55 = vsel %vm197_vm6, %v288_v45, %v194_v54 }
 0x1b3   :  { %v200_v58 = vmul.f32 %v198_v55, %v168_v32 }
 0x1b5   :  { %v206_v59 = vmul.f32 %v281_v52, %v200_v58 }
 0x1b7   :  { %v212_v61 = vadd.f32 %v282_v56, %v206_v59 }
 0x1b9   :  { %v274_v62 = vpack.c.bf16 %v212_v61, %v211_v60 }
 0x1bb   :  { %275 = vst [vmem:[%s381_s6] sm:$0xff] %v274_v62  }
 0x1bc   :  { %221 = vsyncpa [#allocation4], 1 }

// kernel: bert_nn_forward.14
= control target key start
LH: loop header
LB: loop body
LE: loop exit
PB: predicated region body
PF: predicated region fallthrough
CT: control target
= control target key end

     0   :  { %s763_s12 = smov 0   ;;  %s765_s13 = smov 0   ;;  %s853_s0 = inlined_call_operand.vmem [shape: bf16[2,8,384], index: 0, kind: input, shape index: {}, may-alias: {0,1,2}]   ;;  %s854_s1 = inlined_call_operand.vmem [shape: bf16[2,8,384], index: 1, kind: input, shape index: {}, may-alias: {0,1,2}]   ;;  %s855_s2 = inlined_call_operand.vmem [shape: bf16[2,8,384], index: 2, kind: input, shape index: {}, may-alias: {0,1,2}]   ;;  %s856_s3 = inlined_call_operand.vmem [shape: bf16[2,8,128], index: 3, kind: output, shape index: {}]  }
   0x1   :  { %s767_s14 = smov 0  }
   0x2 LB: > { %s25_s15 = sadd.s32 1, %s734_s13  ;;  %p651_p0 = scmp.ge.s32.totalorder %s738_s14, 1  ;;  %s738_s14 = sphi %s767_s14, %s13_s14   ;;  %s734_s13 = sphi %s765_s13, %s858_s13   ;;  %s730_s12 = sphi %s763_s12, %s857_s12  }
   0x3   : > { %p27_p1 = scmp.ge.s32.totalorder %s25_s15, 2  ;;  %p194_p2 = scmp.lt.s32.totalorder %s738_s14, 3 }
   0x5   : > { %s860_s15 = smov (%p27_p1, %s25_s15), 0  ;;  %p195_p3 = pnand %p651_p0, %p194_p2 }
   0x6   : > { %p241_p4 = scmp.lt.s32.totalorder (!%p195_p3), %s730_s12, 1  ;;  %s740_s24 = smov (!%p195_p3), 64  }
   0x7   : > { %198 = sbr.rel (%p195_p3) target bundleno = 1079 (0x437), region = 32  ;;  %s741_s25 = smov (!%p195_p3), 32  }
   0x8   : > { %s742_s26 = smov (!%p195_p3), 96  }
   0xc   : > { %s862_s12 = smov (!%p241_p4, %s730_s12), 1  ;;  %vm280_vm0 = vcmask 261120   ;;  %vm300_vm1 = vcmask 64512   ;;  %vm316_vm2 = vcmask 1043456   ;;  %vm334_vm3 = vcmask 257024  }
   0xd   : > { %s784_s16 = smul.u32 12, %s862_s12  ;;  %s655_s4 = sshll.u32 %s862_s12, 2  ;;  %vm406_vm4 = vcmask 519424   ;;  %vm469_vm5 = vcmask 781824   ;;  %vm532_vm6 = vcmask 1044224  }
   0xe   : > { %s821_s7 = scalar_lea.vmem %s856_s3, %s655_s4 }
   0xf   : > { %s667_s17 = sadd.s32 4, %s784_s16  ;;  %s248_s23 = scalar_lea.vmem %s853_s0, %s784_s16 }
  0x10   : > { %s257_s20 = scalar_lea.vmem %s854_s1, %s667_s17  ;;  %v277_v2 = vld [vmem:[%s248_s23] sm:$0xf]  ;;  %s669_s27 = sadd.s32 8, %s784_s16 }
  0x11   : > { %v278_v0 = vld [vmem:[%s257_s20] sm:$0xf]  ;;  %v337_v5 = vunpack.c.l.b16 %v277_v2  ;;  %s267_s30 = scalar_lea.vmem %s855_s2, %s669_s27 }
  0x12   : > { %v285_v1 = vsel %vm280_vm0, %v278_v0, 0  ;;  %v342_v3 = vunpack.c.l.b16 %v278_v0  ;;  %v279_v20 = vld [vmem:[%s267_s30] sm:$0xf] }
  0x13   : > { %294 = vmatpush.bf16.xpose.msra.mxu0 %v285_v1  ;;  %v338_v6 = vpack.c.b16 %v337_v5, %v337_v5  ;;  %v318_v21 = vsel %vm316_vm2, %v279_v20, 0  ;;  %v378_v42 = vunpack.c.l.b16 %v279_v20 }
  0x14   : > { %v343_v4 = vpack.c.b16 %v342_v3, %v342_v3  ;;  %327 = vmatpush.bf16.msra.mxu1 %v318_v21 }
  0x15   : > { %v379_v43 = vpack.c.b16 %v378_v42, %v378_v42 }
  0x16   : > { %410 = vrot.lane.b32.xlu2 %v343_v4, %s740_s24 }
  0x1a   : > { %656 = vmatmul.msk.bf16.vlgmr.msra.gmra.mxu0 %vm280_vm0, %v277_v2 }
  0x1e   : > { %473 = vrot.lane.b32.xlu2 %v343_v4, %s741_s25 }
  0x26   : > { %408 = vrot.lane.b32.xlu2 %v338_v6, %s740_s24 }
  0x2e   : > { %471 = vrot.lane.b32.xlu2 %v338_v6, %s741_s25 }
  0x70   : > { %v411_v10 = vpop.permute.xlu2 %410 }
  0x71   : > { %v416_v22 = vsel %vm280_vm0, %v411_v10, 0 }
  0x72   : > { %425 = vmatpush.bf16.xpose.msrb.mxu1 %v416_v22 }
  0x78   : > { %v474_v11 = vpop.permute.xlu2 %473 }
  0x79   : > { %v479_v16 = vsel %vm280_vm0, %v474_v11, 0 }
  0x7a   : > { %488 = vmatpush.bf16.xpose.msrb.mxu0 %v479_v16 }
  0x80   : > { %v409_v15 = vpop.permute.xlu2 %408 }
  0x88   : > { %v472_v19 = vpop.permute.xlu2 %471 }
  0x89   : > { %662 = vmatmul.msk.bf16.vlgmr.msrb.gmra.mxu0 %vm280_vm0, %v472_v19 }
  0x97   : > { %v296_v7 = vpop.f32.mrf.mxu0 }
  0x98   : > { %v301_v8 = vsel %vm300_vm1, %v296_v7, -inf }
  0x99   : > { %302 = vmax.xlane.f32.xlu0 %v301_v8 }
  0x9f   : > { %v298_v9 = vpop.f32.mrf.mxu0 }
  0xad   : > { %344 = vrot.lane.b32.xlu0 %v343_v4, %s742_s26 }
 0x106   : > { %v490_v29 = vpop.f32.mrf.mxu0 }
 0x107   : > { %v494_v30 = vsel %vm300_vm1, %v490_v29, -inf }
 0x10c   : > { %v303_v12 = vpop.xlane.xlu0 %302 }
 0x10d   : > { %v304_v13 = vsub.f32 %v296_v7, %v303_v12 }
 0x10e   : > { %v492_v31 = vpop.f32.mrf.mxu0 }
 0x10f   : > { %v305_v14 = vmul.f32 1.442695, %v304_v13 }
 0x111   : > { %700 = vpow2.f32 %v305_v14 }
 0x117   : > { %v701_v17 = vpop.eup %700 }
 0x118   : > { %v307_v18 = vsel %vm300_vm1, %v701_v17, 0.0 }
 0x119   : > { %308 = vadd.xlane.f32.xlu1 %v307_v18 }
 0x11f   : > { %v345_v23 = vpop.permute.xlu0 %344 }
 0x120   : > { %v350_v24 = vsel %vm280_vm0, %v345_v23, 0 }
 0x121   : > { %359 = vmatpush.bf16.xpose.msra.mxu2 %v350_v24 }
 0x132   : > { %339 = vrot.lane.b32.xlu1 %v338_v6, %s742_s26 }
 0x15c   : > { %495 = vmax.xlane.f32.xlu1 %v494_v30 }
 0x18c   : > { %v309_v25 = vpop.xlane.xlu1 %308 }
 0x18d   : > { %702 = vrcp.f32 %v309_v25 }
 0x193   : > { %v703_v26 = vpop.eup %702 }
 0x194   : > { %v311_v27 = vmul.f32 %v703_v26, %v701_v17 }
 0x196   : > { %v312_v28 = vpack.c.bf16 %v311_v27, %v311_v27 }
 0x198   : > { %657 = vmatmul.msk.bf16.vlgmr.msra.gmra.mxu1 %vm300_vm1, %v312_v28 }
 0x1a4   : > { %v340_v32 = vpop.permute.xlu1 %339 }
 0x1a5   : > { %658 = vmatmul.msk.bf16.vlgmr.msra.gmra.mxu2 %vm280_vm0, %v340_v32 }
 0x1a8   : > { %660 = vmatmul.msk.bf16.vlgmr.msrb.gmra.mxu1 %vm280_vm0, %v409_v15 }
 0x1cf   : > { %v496_v46 = vpop.xlane.xlu1 %495 }
 0x1d0   : > { %v497_v50 = vsub.f32 %v490_v29, %v496_v46 }
 0x1d2   : > { %v498_v52 = vmul.f32 1.442695, %v497_v50 }
 0x215   : > { %v329_v33 = vpop.f32.mrf.mxu1 }
 0x216   : > { %v333_v34 = vpack.c.bf16 %v329_v33, %v329_v33 }
 0x218   : > { %335 = vst.msk [vmem:[%s821_s7] sm:$0xf] %vm334_vm3, %v333_v34 }
 0x21d   : > { %v331_v35 = vpop.f32.mrf.mxu1 }
 0x225   : > { %v427_v36 = vpop.f32.mrf.mxu1 }
 0x226   : > { %v431_v37 = vsel %vm300_vm1, %v427_v36, -inf }
 0x227   : > { %432 = vmax.xlane.f32.xlu2 %v431_v37 }
 0x228   : > { %v361_v38 = vpop.f32.mrf.mxu2 }
 0x229   : > { %v365_v39 = vsel %vm300_vm1, %v361_v38, -inf }
 0x22a   : > { %366 = vmax.xlane.f32.xlu0 %v365_v39 }
 0x22d   : > { %v429_v40 = vpop.f32.mrf.mxu1 }
 0x230   : > { %v363_v41 = vpop.f32.mrf.mxu2 }
 0x23f   : > { %380 = vrot.lane.b32.xlu2 %v379_v43, %s742_s26 }
 0x29a   : > { %v433_v44 = vpop.xlane.xlu2 %432 }
 0x29b   : > { %v434_v45 = vsub.f32 %v427_v36, %v433_v44 }
 0x29d   : > { %v435_v47 = vmul.f32 1.442695, %v434_v45  ;;  %v367_v48 = vpop.xlane.xlu0 %366 }
 0x29e   : > { %v368_v49 = vsub.f32 %v361_v38, %v367_v48 }
 0x29f   : > { %704 = vpow2.f32 %v435_v47 }
 0x2a0   : > { %v369_v51 = vmul.f32 1.442695, %v368_v49 }
 0x2a2   : > { %706 = vpow2.f32 %v369_v51  ;;  %v381_v59 = vpop.permute.xlu2 %380 }
 0x2a3   : > { %708 = vpow2.f32 %v498_v52  ;;  %v386_v60 = vsel %vm316_vm2, %v381_v59, 0 }
 0x2a4   : > { %395 = vmatpush.bf16.msra.mxu3 %v386_v60 }
 0x2a5   : > { %v705_v53 = vpop.eup %704 }
 0x2a6   : > { %v437_v54 = vsel %vm300_vm1, %v705_v53, 0.0 }
 0x2a7   : > { %438 = vadd.xlane.f32.xlu1 %v437_v54 }
 0x2a8   : > { %v707_v55 = vpop.eup %706 }
 0x2a9   : > { %v371_v56 = vsel %vm300_vm1, %v707_v55, 0.0  ;;  %v709_v57 = vpop.eup %708 }
 0x2aa   : > { %372 = vadd.xlane.f32.xlu0 %v371_v56  ;;  %v500_v58 = vsel %vm300_vm1, %v709_v57, 0.0 }
 0x2b2   : > { %501 = vadd.xlane.f32.xlu0 %v500_v58 }
 0x2c0   : > { %443 = vrot.lane.b32.xlu1 %v379_v43, %s740_s24 }
 0x2c6   : > { %506 = vrot.lane.b32.xlu0 %v379_v43, %s741_s25 }
 0x31a   : > { %v439_v0 = vpop.xlane.xlu1 %438 }
 0x31d   : > { %v373_v61 = vpop.xlane.xlu0 %372 }
 0x31e   : > { %710 = vrcp.f32 %v373_v61 }
 0x31f   : > { %712 = vrcp.f32 %v439_v0 }
 0x324   : > { %v711_v62 = vpop.eup %710 }
 0x325   : > { %v375_v63 = vmul.f32 %v711_v62, %v707_v55  ;;  %v502_v2 = vpop.xlane.xlu0 %501  ;;  %v713_v3 = vpop.eup %712 }
 0x326   : > { %714 = vrcp.f32 %v502_v2  ;;  %v441_v5 = vmul.f32 %v713_v3, %v705_v53 }
 0x327   : > { %v376_v1 = vpack.c.bf16 %v375_v63, %v375_v63 }
 0x328   : > { %v442_v9 = vpack.c.bf16 %v441_v5, %v441_v5 }
 0x329   : > { %659 = vmatmul.msk.bf16.vlgmr.msra.gmra.mxu3 %vm300_vm1, %v376_v1 }
 0x32c   : > { %v715_v7 = vpop.eup %714 }
 0x32d   : > { %v504_v8 = vmul.f32 %v715_v7, %v709_v57 }
 0x32f   : > { %v505_v12 = vpack.c.bf16 %v504_v8, %v504_v8 }
 0x332   : > { %v444_v4 = vpop.permute.xlu1 %443 }
 0x333   : > { %v449_v6 = vsel %vm316_vm2, %v444_v4, 0 }
 0x334   : > { %458 = vmatpush.bf16.msrb.mxu3 %v449_v6 }
 0x338   : > { %v507_v10 = vpop.permute.xlu0 %506 }
 0x339   : > { %661 = vmatmul.msk.bf16.vlgmr.msrb.gmra.mxu3 %vm300_vm1, %v442_v9  ;;  %v512_v11 = vsel %vm316_vm2, %v507_v10, 0 }
 0x33a   : > { %521 = vmatpush.bf16.msrb.mxu2 %v512_v11 }
 0x33d   : > { %663 = vmatmul.msk.bf16.vlgmr.msrb.gmra.mxu2 %vm300_vm1, %v505_v12 }
 0x3ac   : > { %v397_v13 = vpop.f32.mrf.mxu3 }
 0x3ad   : > { %v401_v14 = vpack.c.bf16 %v397_v13, %v397_v13 }
 0x3af   : > { %403 = vrot.lane.b32.xlu2 %v401_v14, %s741_s25 }
 0x3b4   : > { %v399_v15 = vpop.f32.mrf.mxu3 }
 0x3bc   : > { %v460_v16 = vpop.f32.mrf.mxu3 }
 0x3bd   : > { %v464_v17 = vpack.c.bf16 %v460_v16, %v460_v16 }
 0x3bf   : > { %466 = vrot.lane.b32.xlu2 %v464_v17, %s740_s24 }
 0x3c0   : > { %v523_v18 = vpop.f32.mrf.mxu2 }
 0x3c1   : > { %v527_v19 = vpack.c.bf16 %v523_v18, %v523_v18 }
 0x3c3   : > { %529 = vrot.lane.b32.xlu0 %v527_v19, %s742_s26 }
 0x3c4   : > { %v462_v20 = vpop.f32.mrf.mxu3 }
 0x3c8   : > { %v525_v21 = vpop.f32.mrf.mxu2 }
 0x409   : > { %v404_v22 = vpop.permute.xlu2 %403 }
 0x40a   : > { %407 = vst.msk [vmem:[%s821_s7] sm:$0xf] %vm406_vm4, %v404_v22 }
 0x419   : > { %v467_v23 = vpop.permute.xlu2 %466 }
 0x41a   : > { %470 = vst.msk [vmem:[%s821_s7] sm:$0xf] %vm469_vm5, %v467_v23 }
 0x435   : > { %v530_v24 = vpop.permute.xlu0 %529 }
 0x436   : > { %533 = vst.msk [vmem:[%s821_s7] sm:$0xf] %vm532_vm6, %v530_v24 }
 0x437 PF: > { %s13_s14 = sadd.s32 1, %s738_s14   ;;  %s857_s12 = smov %s734_s13 }
 0x438   : > { %p10_p5 = scmp.ge.s32.totalorder %s13_s14, 4   ;;  %s858_s13 = smov %s860_s15 }
 0x43a   :  { %12 = sbr.rel (!%p10_p5) target bundleno = 2 (0x2), region = 68 }

// kernel: bert_nn_forward.16
= control target key start
LH: loop header
LB: loop body
LE: loop exit
PB: predicated region body
PF: predicated region fallthrough
CT: control target
= control target key end

     0   :  { %s448_s1 = inlined_call_operand.vmem [shape: bf16[128,256], index: 1, kind: input, shape index: {}]   ;;  %s449_s0 = inlined_call_operand.vmem [shape: bf16[16,128], index: 0, kind: input, shape index: {}]   ;;  %s450_s2 = inlined_call_operand.vmem [shape: f32[1,256], index: 2, kind: input, shape index: {}]   ;;  %s451_s3 = inlined_call_operand.vmem [shape: bf16[16,256], index: 3, kind: output, shape index: {}]  }
   0x1   :  { %v289_v0 = vld [vmem:[%s448_s1 + $0x70] sm:$0xf]  ;;  %v311_v1 = vld [vmem:[%s448_s1 + $0x74] sm:$0xf0]  ;;  %v310_v2 = vld [vmem:[%s448_s1 + $0x74] sm:$0xf] }
   0x2   :  { %v290_v3 = vor.u32 %v311_v1, %v289_v0  ;;  %v291_v4 = vld [vmem:[%s448_s1 + $0x78] sm:$0xf0]  ;;  %v281_v5 = vld [vmem:[%s448_s1 + $0x60] sm:$0xf]  ;;  %v309_v6 = vld [vmem:[%s448_s1 + $0x64] sm:$0xf0] }
   0x3   :  { %v294_v7 = vor.u32 %v310_v2, %v291_v4  ;;  %v308_v8 = vld [vmem:[%s448_s1 + $0x64] sm:$0xf]  ;;  %v283_v9 = vld [vmem:[%s448_s1 + $0x68] sm:$0xf0]  ;;  %v282_v10 = vor.u32 %v309_v6, %v281_v5  ;;  %v273_v12 = vld [vmem:[%s448_s1 + $0x50] sm:$0xf] }
   0x4   :  { %130 = vmatpush.bf16.msra.mxu0 %v290_v3  ;;  %v286_v11 = vor.u32 %v308_v8, %v283_v9  ;;  %v307_v13 = vld [vmem:[%s448_s1 + $0x54] sm:$0xf0]  ;;  %v306_v14 = vld [vmem:[%s448_s1 + $0x54] sm:$0xf]  ;;  %v275_v15 = vld [vmem:[%s448_s1 + $0x58] sm:$0xf0] }
   0x5   :  { %144 = vmatpush.bf16.msra.mxu1 %v294_v7  ;;  %v274_v16 = vor.u32 %v307_v13, %v273_v12  ;;  %v278_v17 = vor.u32 %v306_v14, %v275_v15  ;;  %v265_v18 = vld [vmem:[%s448_s1 + $0x40] sm:$0xf]  ;;  %v305_v19 = vld [vmem:[%s448_s1 + $0x44] sm:$0xf0]  ;;  %v304_v20 = vld [vmem:[%s448_s1 + $0x44] sm:$0xf] }
   0x6   :  { %v267_v21 = vld [vmem:[%s448_s1 + $0x48] sm:$0xf0]  ;;  %v266_v22 = vor.u32 %v305_v19, %v265_v18  ;;  %v257_v24 = vld [vmem:[%s448_s1 + $0x30] sm:$0xf]  ;;  %v303_v25 = vld [vmem:[%s448_s1 + $0x34] sm:$0xf0] }
   0x7   :  { %v270_v23 = vor.u32 %v304_v20, %v267_v21  ;;  %v302_v26 = vld [vmem:[%s448_s1 + $0x34] sm:$0xf]  ;;  %v259_v27 = vld [vmem:[%s448_s1 + $0x38] sm:$0xf0]  ;;  %v258_v28 = vor.u32 %v303_v25, %v257_v24  ;;  %v249_v30 = vld [vmem:[%s448_s1 + $0x20] sm:$0xf] }
   0x8   :  { %131 = vmatpush.bf16.msra.mxu0 %v282_v10  ;;  %v262_v29 = vor.u32 %v302_v26, %v259_v27  ;;  %v301_v31 = vld [vmem:[%s448_s1 + $0x24] sm:$0xf0]  ;;  %v300_v32 = vld [vmem:[%s448_s1 + $0x24] sm:$0xf]  ;;  %v251_v33 = vld [vmem:[%s448_s1 + $0x28] sm:$0xf0] }
   0x9   :  { %145 = vmatpush.bf16.msra.mxu1 %v286_v11  ;;  %v250_v34 = vor.u32 %v301_v31, %v249_v30  ;;  %v254_v35 = vor.u32 %v300_v32, %v251_v33  ;;  %v241_v36 = vld [vmem:[%s448_s1 + $0x10] sm:$0xf]  ;;  %v299_v37 = vld [vmem:[%s448_s1 + $0x14] sm:$0xf0]  ;;  %v298_v38 = vld [vmem:[%s448_s1 + $0x14] sm:$0xf] }
   0xa   :  { %v243_v39 = vld [vmem:[%s448_s1 + $0x18] sm:$0xf0]  ;;  %v242_v40 = vor.u32 %v299_v37, %v241_v36  ;;  %v233_v42 = vld [vmem:[%s448_s1] sm:$0xf]  ;;  %v297_v43 = vld [vmem:[%s448_s1 + $0x4] sm:$0xf0] }
   0xb   :  { %v246_v41 = vor.u32 %v298_v38, %v243_v39  ;;  %v296_v44 = vld [vmem:[%s448_s1 + $0x4] sm:$0xf]  ;;  %v235_v45 = vld [vmem:[%s448_s1 + $0x8] sm:$0xf0]  ;;  %v234_v46 = vor.u32 %v297_v43, %v233_v42  ;;  %v173_v49 = vld [vmem:[%s450_s2] sm:$0x3] }
   0xc   :  { %132 = vmatpush.bf16.msra.mxu0 %v274_v16  ;;  %v238_v47 = vor.u32 %v296_v44, %v235_v45  ;;  %v295_v48 = vld [vmem:[%s449_s0] sm:$0xff]  ;;  %v175_v50 = vperm.slane %v173_v49, 0  ;;  %v176_v51 = vperm.slane %v173_v49, 1 }
   0xd   :  { %146 = vmatpush.bf16.msra.mxu1 %v278_v17 }
  0x10   :  { %133 = vmatpush.bf16.msra.mxu0 %v266_v22 }
  0x11   :  { %147 = vmatpush.bf16.msra.mxu1 %v270_v23 }
  0x14   :  { %134 = vmatpush.bf16.msra.mxu0 %v258_v28 }
  0x15   :  { %148 = vmatpush.bf16.msra.mxu1 %v262_v29 }
  0x18   :  { %135 = vmatpush.bf16.msra.mxu0 %v250_v34 }
  0x19   :  { %149 = vmatpush.bf16.msra.mxu1 %v254_v35 }
  0x1c   :  { %136 = vmatpush.bf16.msra.mxu0 %v242_v40 }
  0x1d   :  { %150 = vmatpush.bf16.msra.mxu1 %v246_v41 }
  0x20   :  { %137 = vmatpush.bf16.msra.mxu0 %v234_v46 }
  0x21   :  { %151 = vmatpush.bf16.msra.mxu1 %v238_v47 }
  0x23   :  { %138 = vmatmul.bf16.vlgmr.msra.gmra.mxu0 %v295_v48 }
  0x24   :  { %152 = vmatmul.bf16.vlgmr.msra.gmra.mxu1 %v295_v48 }
  0xa0   :  { %v139_v52 = vpop.f32.mrf.mxu0 }
  0xa1   :  { %v179_v53 = vadd.f32 %v175_v50, %v139_v52  ;;  %v153_v54 = vpop.f32.mrf.mxu1 }
  0xa2   :  { %v180_v55 = vadd.f32 %v176_v51, %v153_v54 }
  0xa3   :  { %v187_v56 = vmul.f32 0.044715, %v179_v53  ;;  %v183_v17 = vmul.f32 0.5, %v179_v53 }
  0xa4   :  { %v188_v57 = vmul.f32 0.044715, %v180_v55  ;;  %v184_v20 = vmul.f32 0.5, %v180_v55 }
  0xa5   :  { %v191_v58 = vmul.f32 %v187_v56, %v179_v53 }
  0xa6   :  { %v192_v59 = vmul.f32 %v188_v57, %v180_v55 }
  0xa7   :  { %v195_v60 = vmul.f32 %v191_v58, %v179_v53 }
  0xa8   :  { %v196_v61 = vmul.f32 %v192_v59, %v180_v55  ;;  %v141_v62 = vpop.f32.mrf.mxu0 }
  0xa9   :  { %v199_v63 = vadd.f32 %v195_v60, %v179_v53  ;;  %v181_v0 = vadd.f32 %v175_v50, %v141_v62  ;;  %v155_v1 = vpop.f32.mrf.mxu1 }
  0xaa   :  { %v200_v2 = vadd.f32 %v196_v61, %v180_v55  ;;  %v182_v3 = vadd.f32 %v176_v51, %v155_v1 }
  0xab   :  { %v203_v4 = vmul.f32 0.7978846, %v199_v63  ;;  %v189_v5 = vmul.f32 0.044715, %v181_v0  ;;  %v185_v27 = vmul.f32 0.5, %v181_v0 }
  0xac   :  { %v204_v6 = vmul.f32 0.7978846, %v200_v2  ;;  %v190_v7 = vmul.f32 0.044715, %v182_v3  ;;  %v186_v29 = vmul.f32 0.5, %v182_v3 }
  0xad   :  { %312 = vtanh.f32 %v203_v4  ;;  %v193_v8 = vmul.f32 %v189_v5, %v181_v0 }
  0xae   :  { %314 = vtanh.f32 %v204_v6  ;;  %v194_v9 = vmul.f32 %v190_v7, %v182_v3 }
  0xaf   :  { %v197_v10 = vmul.f32 %v193_v8, %v181_v0 }
  0xb0   :  { %v198_v11 = vmul.f32 %v194_v9, %v182_v3 }
  0xb1   :  { %v201_v12 = vadd.f32 %v197_v10, %v181_v0 }
  0xb2   :  { %v202_v13 = vadd.f32 %v198_v11, %v182_v3 }
  0xb3   :  { %v313_v14 = vpop.eup %312  ;;  %v205_v15 = vmul.f32 0.7978846, %v201_v12 }
  0xb4   :  { %v315_v16 = vpop.eup %314  ;;  %v211_v18 = vadd.f32 1.0, %v313_v14  ;;  %v206_v19 = vmul.f32 0.7978846, %v202_v13 }
  0xb5   :  { %v212_v21 = vadd.f32 1.0, %v315_v16  ;;  %316 = vtanh.f32 %v205_v15 }
  0xb6   :  { %v215_v22 = vmul.f32 %v211_v18, %v183_v17  ;;  %318 = vtanh.f32 %v206_v19 }
  0xb7   :  { %v216_v23 = vmul.f32 %v212_v21, %v184_v20 }
  0xb9   :  { %v219_v24 = vpack.c.bf16 %v216_v23, %v215_v22 }
  0xbb   :  { %v317_v25 = vpop.eup %316  ;;  %221 = vst [vmem:[%s451_s3] sm:$0xff] %v219_v24 }
  0xbc   :  { %v319_v26 = vpop.eup %318  ;;  %v213_v28 = vadd.f32 1.0, %v317_v25 }
  0xbd   :  { %v214_v30 = vadd.f32 1.0, %v319_v26 }
  0xbe   :  { %v217_v31 = vmul.f32 %v213_v28, %v185_v27 }
  0xbf   :  { %v218_v32 = vmul.f32 %v214_v30, %v186_v29 }
  0xc1   :  { %v220_v33 = vpack.c.bf16 %v218_v32, %v217_v31 }
  0xc3   :  { %222 = vst [vmem:[%s451_s3 + $0x8] sm:$0xff] %v220_v33 }

// kernel: bert_nn_forward.23
= control target key start
LH: loop header
LB: loop body
LE: loop exit
PB: predicated region body
PF: predicated region fallthrough
CT: control target
= control target key end

     0   :  { %8 = vsyncpa [#allocation3], 0  ;;  %s503_s12 = smov 0   ;;  %s530_s0 = inlined_call_operand.vmem [shape: bf16[16,128], index: 0, kind: input, shape index: {}]   ;;  %s531_s1 = inlined_call_operand.hbm [shape: bf16[128,128], index: 1, kind: input, shape index: {}]   ;;  %s532_s2 = inlined_call_operand.vmem [shape: f32[1,128], index: 2, kind: input, shape index: {}]   ;;  %s533_s3 = inlined_call_operand.vmem [shape: f32[16,128], index: 3, kind: output, shape index: {}]  }
   0x1 LB: > { %s124_s15 = sshll.u32 %s531_s1, 4  ;;  %s361_s16 = sadd.s32 4294967295, %s478_s12   ;;  %s478_s12 = sphi %s503_s12, %s14_s12   ;;  %s125_s15 = int_to_ptr.hbm [resolvable:$true] %s124_s15 }
   0x2   : > { %p363_p0 = scmp.ge.s32.totalorder %s478_s12, 1  ;;  %p113_p1 = scmp.lt.s32.totalorder %s478_s12, 3 }
   0x3   : > { %p420_p2 = scmp.eq.s32.totalorder %s361_s16, 0  ;;  %s480_s17 = smov [#allocation2]  }
   0x4   : > { %p114_p3 = pnand %p363_p0, %p113_p1  ;;  %s126_s18 = sshll.u32 %s480_s17, 4  ;;  %s127_s18 = int_to_ptr.vmem [resolvable:$true] %s126_s18 }
   0x5   : > { %s481_s19 = smov 64   ;;  %s482_s20 = smov 4  }
   0x6   : > { %p416_p4 = pneg %p114_p3  ;;  %152 = sbr.rel (%p114_p3) target bundleno = 227 (0xe3), region = 32 }
   0x8   : > { %p417_p5 = pnand %p420_p2, %p416_p4 }
   0xa   : > { %419 = dma.hbm_to_vmem [thread:$0]  (!%p417_p5), %s125_s15, 1024, %s127_s18, [#allocation3], %s481_s19, %s481_s19, %s482_s20  }
   0xb   : > { %473 = dma.done.wait (%p420_p2), [#allocation3], 1024  }
   0xc   : > { %475 = vsyncadd (%p420_p2), [#allocation3], 4294966272  ;;  %v411_v0 = vld [vmem:[#allocation2 + $0x38] sm:$0xff]  ;;  %v410_v1 = vld [vmem:[#allocation2 + $0x30] sm:$0xff]  ;;  %p175_p6 = scmp.lt.s32.totalorder %s361_s16, 1 }
   0xd   : > { %252 = vmatpush.bf16.msra.mxu0 %v411_v0  ;;  %v409_v2 = vld [vmem:[#allocation2 + $0x28] sm:$0xff]  ;;  %v408_v3 = vld [vmem:[#allocation2 + $0x20] sm:$0xff]  ;;  %v407_v4 = vld [vmem:[#allocation2 + $0x18] sm:$0xff] }
   0xe   : > { %v406_v5 = vld [vmem:[#allocation2 + $0x10] sm:$0xff]  ;;  %s535_s16 = smov (!%p175_p6, %s361_s16), 1  ;;  %v405_v6 = vld [vmem:[#allocation2 + $0x8] sm:$0xff]  ;;  %v404_v7 = vld [vmem:[#allocation2] sm:$0xff] }
   0xf   : > { %s368_s21 = sshll.u32 %s535_s16, 2  ;;  %v433_v9 = vld [vmem:[%s532_s2] ss:$0 sm:$0xff]  ;;  %s369_s27 = sshll.u32 %s535_s16, 3 }
  0x10   : > { %s178_s24 = scalar_lea.vmem %s530_s0, %s368_s21  ;;  %s182_s30 = scalar_lea.vmem %s533_s3, %s369_s27 }
  0x11   : > { %253 = vmatpush.bf16.msra.mxu0 %v410_v1  ;;  %v183_v8 = vld [vmem:[%s178_s24] sm:$0xf] }
  0x15   : > { %254 = vmatpush.bf16.msra.mxu0 %v409_v2 }
  0x19   : > { %255 = vmatpush.bf16.msra.mxu0 %v408_v3 }
  0x1d   : > { %256 = vmatpush.bf16.msra.mxu0 %v407_v4 }
  0x21   : > { %257 = vmatpush.bf16.msra.mxu0 %v406_v5 }
  0x25   : > { %258 = vmatpush.bf16.msra.mxu0 %v405_v6 }
  0x29   : > { %259 = vmatpush.bf16.msra.mxu0 %v404_v7 }
  0x2c   : > { %260 = vmatmul.bf16.vlgmr.msra.gmra.mxu0 %v183_v8 }
  0xa9   : > { %v261_v10 = vpop.f32.mrf.mxu0 }
  0xaa   : > { %v262_v11 = vadd.f32 %v433_v9, %v261_v10 }
  0xac   : > { %v265_v12 = vrot.slane %v262_v11, 4 }
  0xae   : > { %v266_v13 = vmax.f32 %v262_v11, %v265_v12 }
  0xb0   : > { %v267_v14 = vrot.slane %v266_v13, 2 }
  0xb1   : > { %v263_v15 = vpop.f32.mrf.mxu0 }
  0xb2   : > { %v268_v16 = vmax.f32 %v266_v13, %v267_v14 }
  0xb4   : > { %v269_v17 = vrot.slane %v268_v16, 1 }
  0xb6   : > { %v270_v18 = vmax.f32 %v268_v16, %v269_v17 }
  0xb8   : > { %v271_v19 = vsub.f32 %v262_v11, %v270_v18 }
  0xba   : > { %v272_v20 = vmul.f32 1.442695, %v271_v19 }
  0xbc   : > { %434 = vpow2.f32 %v272_v20 }
  0xc2   : > { %v435_v21 = vpop.eup %434 }
  0xc3   : > { %v274_v22 = vrot.slane %v435_v21, 4 }
  0xc5   : > { %v275_v23 = vadd.f32 %v435_v21, %v274_v22 }
  0xc7   : > { %v276_v24 = vrot.slane %v275_v23, 2 }
  0xc9   : > { %v277_v25 = vadd.f32 %v276_v24, %v275_v23 }
  0xcb   : > { %v278_v26 = vrot.slane %v277_v25, 1 }
  0xcd   : > { %v279_v27 = vadd.f32 %v278_v26, %v277_v25 }
  0xcf   : > { %436 = vrcp.f32 %v279_v27  ;;  %v291_v31 = vand.u32 2147483648, %v279_v27  ;;  %v289_v33 = vand.u32 2147483647, %v279_v27  ;;  %vm285_vm1 = vweird.f32 %v279_v27 }
  0xd1   : > { %v292_v35 = vor.u32 1.1754944e-38, %v291_v31  ;;  %vm290_vm3 = vcmp.eq.f32.partialorder %v289_v33, 8.507059e+37 }
  0xd5   : > { %v437_v28 = vpop.eup %436 }
  0xd6   : > { %v281_v29 = vmul.f32 %v437_v28, %v279_v27  ;;  %vm286_vm0 = vweird.f32 %v437_v28 }
  0xd7   : > { %vm287_vm2 = vmor %vm285_vm1, %vm286_vm0 }
  0xd8   : > { %v282_v30 = vsub.f32 1.0, %v281_v29 }
  0xda   : > { %v283_v32 = vmul.f32 %v437_v28, %v282_v30 }
  0xdc   : > { %v284_v34 = vadd.f32 %v437_v28, %v283_v32 }
  0xde   : > { %v288_v36 = vsel %vm287_vm2, %v437_v28, %v284_v34 }
  0xdf   : > { %v293_v37 = vsel %vm290_vm3, %v292_v35, %v288_v36 }
  0xe0   : > { %v294_v38 = vmul.f32 %v435_v21, %v293_v37 }
  0xe2   : > { %295 = vst [vmem:[%s182_s30] sm:$0xff] %v294_v38 }
  0xe3 PF: > { %s14_s12 = sadd.s32 1, %s478_s12  }
  0xe4   : > { %p11_p7 = scmp.ge.s32.totalorder %s14_s12, 4  }
  0xe6   :  { %13 = sbr.rel (!%p11_p7) target bundleno = 1 (0x1), region = 67 }
  0xeb   :  { %315 = vsyncpa [#allocation3], 1 }
  0xec   :  { %317 = vsyncpa [#allocation3 + $0x1], 1 }

// kernel: bert_nn_forward.17
= control target key start
LH: loop header
LB: loop body
LE: loop exit
PB: predicated region body
PF: predicated region fallthrough
CT: control target
= control target key end

     0   :  { %11 = vsyncpa [#allocation4], 0  ;;  %s442_s24 = smov [#allocation3]   ;;  %s443_s26 = smov 64   ;;  %s511_s0 = inlined_call_operand.vmem [shape: bf16[16,256], index: 0, kind: input, shape index: {}]   ;;  %s512_s1 = inlined_call_operand.hbm [shape: bf16[256,128], index: 1, kind: input, shape index: {}]   ;;  %s513_s2 = inlined_call_operand.vmem [shape: f32[1,128], index: 2, kind: input, shape index: {}]   ;;  %s514_s3 = inlined_call_operand.vmem [shape: bf16[16,128], index: 3, kind: input, shape index: {}]   ;;  %s515_s4 = inlined_call_operand.vmem [shape: f32[1,128], index: 4, kind: input, shape index: {}]   ;;  %s516_s5 = inlined_call_operand.vmem [shape: f32[1,128], index: 5, kind: input, shape index: {}]   ;;  %s517_s6 = inlined_call_operand.vmem [shape: bf16[16,128], index: 6, kind: output, shape index: {}]  }
   0x1   :  { %s18_s23 = sshll.u32 %s512_s1, 4  ;;  %s20_s25 = sshll.u32 %s442_s24, 4  ;;  %s19_s23 = int_to_ptr.hbm [resolvable:$true] %s18_s23  ;;  %s21_s25 = int_to_ptr.vmem [resolvable:$true] %s20_s25 }
   0x2   :  { %s444_s27 = smov 4  }
   0x3   :  { %26 = dma.hbm_to_vmem [thread:$0]  %s19_s23, 2048, %s21_s25, [#allocation4], %s443_s26, %s443_s26, %s444_s27  }
   0x4   :  { %440 = dma.done.wait [#allocation4], 2048  }
   0x5   :  { %441 = vsyncadd [#allocation4], 4294965248  ;;  %v385_v0 = vld [vmem:[#allocation3 + $0x38] sm:$0xff]  ;;  %v384_v2 = vld [vmem:[#allocation3 + $0x30] sm:$0xff]  ;;  %v445_v36 = vmov 128.0  }
   0x6   :  { %v393_v1 = vld [vmem:[#allocation3 + $0x78] sm:$0xff]  ;;  %187 = vmatpush.bf16.msra.mxu0 %v385_v0  ;;  %v392_v3 = vld [vmem:[#allocation3 + $0x70] sm:$0xff]  ;;  %v383_v4 = vld [vmem:[#allocation3 + $0x28] sm:$0xff]  ;;  %410 = vrcp.f32 %v445_v36 }
   0x7   :  { %201 = vmatpush.bf16.msra.mxu1 %v393_v1  ;;  %v391_v5 = vld [vmem:[#allocation3 + $0x68] sm:$0xff]  ;;  %v382_v6 = vld [vmem:[#allocation3 + $0x20] sm:$0xff]  ;;  %v381_v8 = vld [vmem:[#allocation3 + $0x18] sm:$0xff] }
   0x8   :  { %v390_v7 = vld [vmem:[#allocation3 + $0x60] sm:$0xff]  ;;  %v389_v9 = vld [vmem:[#allocation3 + $0x58] sm:$0xff]  ;;  %v380_v10 = vld [vmem:[#allocation3 + $0x10] sm:$0xff] }
   0x9   :  { %v388_v11 = vld [vmem:[#allocation3 + $0x50] sm:$0xff]  ;;  %v379_v12 = vld [vmem:[#allocation3 + $0x8] sm:$0xff]  ;;  %v378_v14 = vld [vmem:[#allocation3] sm:$0xff] }
   0xa   :  { %188 = vmatpush.bf16.msra.mxu0 %v384_v2  ;;  %v387_v13 = vld [vmem:[#allocation3 + $0x48] sm:$0xff]  ;;  %v386_v15 = vld [vmem:[#allocation3 + $0x40] sm:$0xff] }
   0xb   :  { %202 = vmatpush.bf16.msra.mxu1 %v392_v3  ;;  %v306_v16 = vld [vmem:[%s511_s0] sm:$0xf]  ;;  %v377_v17 = vld [vmem:[%s511_s0 + $0x4] sm:$0xf0]  ;;  %v376_v18 = vld [vmem:[%s511_s0 + $0x4] sm:$0xf] }
   0xc   :  { %v308_v19 = vld [vmem:[%s511_s0 + $0x8] sm:$0xf0]  ;;  %v307_v20 = vor.u32 %v377_v17, %v306_v16  ;;  %v395_v22 = vld [vmem:[%s514_s3] sm:$0xff]   ;;  %v411_v37 = vpop.eup %410 }
   0xd   :  { %v311_v21 = vor.u32 %v376_v18, %v308_v19  ;;  %v407_v23 = vld [vmem:[%s513_s2] ss:$0 sm:$0xff]  ;;  %v396_v27 = vunpack.c.l.bf16 %v395_v22  ;;  %v397_v33 = vunpack.c.h.bf16 %v395_v22  ;;  %v241_v38 = vmul.f32 128.0, %v411_v37 }
   0xe   :  { %189 = vmatpush.bf16.msra.mxu0 %v383_v4  ;;  %vm245_vm0 = vweird.f32 %v411_v37 }
   0xf   :  { %203 = vmatpush.bf16.msra.mxu1 %v391_v5  ;;  %v242_v39 = vsub.f32 1.0, %v241_v38  ;;  %v408_v5 = vld [vmem:[%s515_s4] ss:$0 sm:$0xff] }
  0x11   :  { %v243_v40 = vmul.f32 %v411_v37, %v242_v39 }
  0x12   :  { %190 = vmatpush.bf16.msra.mxu0 %v382_v6 }
  0x13   :  { %204 = vmatpush.bf16.msra.mxu1 %v390_v7  ;;  %v244_v41 = vadd.f32 %v411_v37, %v243_v40 }
  0x15   :  { %v246_v42 = vsel %vm245_vm0, %v411_v37, %v244_v41 }
  0x16   :  { %191 = vmatpush.bf16.msra.mxu0 %v381_v8 }
  0x17   :  { %205 = vmatpush.bf16.msra.mxu1 %v389_v9  ;;  %v409_v9 = vld [vmem:[%s516_s5] ss:$0 sm:$0xff] }
  0x1a   :  { %192 = vmatpush.bf16.msra.mxu0 %v380_v10 }
  0x1b   :  { %206 = vmatpush.bf16.msra.mxu1 %v388_v11 }
  0x1e   :  { %193 = vmatpush.bf16.msra.mxu0 %v379_v12 }
  0x1f   :  { %207 = vmatpush.bf16.msra.mxu1 %v387_v13 }
  0x22   :  { %194 = vmatpush.bf16.msra.mxu0 %v378_v14 }
  0x23   :  { %208 = vmatpush.bf16.msra.mxu1 %v386_v15 }
  0x25   :  { %195 = vmatmul.bf16.vlgmr.msra.gmra.mxu0 %v307_v20 }
  0x26   :  { %209 = vmatmul.bf16.vlgmr.msra.gmra.mxu1 %v311_v21 }
  0xa2   :  { %v196_v24 = vpop.f32.mrf.mxu0 }
  0xa3   :  { %v210_v25 = vpop.f32.mrf.mxu1 }
  0xa4   :  { %v211_v26 = vadd.f32 %v210_v25, %v196_v24 }
  0xa6   :  { %v228_v28 = vadd.f32 %v407_v23, %v211_v26 }
  0xa8   :  { %v234_v29 = vadd.f32 %v396_v27, %v228_v28 }
  0xaa   :  { %236 = vadd.xlane.f32.xlu0 %v234_v29  ;;  %v198_v30 = vpop.f32.mrf.mxu0 }
  0xab   :  { %v212_v31 = vpop.f32.mrf.mxu1 }
  0xac   :  { %v213_v32 = vadd.f32 %v212_v31, %v198_v30 }
  0xae   :  { %v229_v34 = vadd.f32 %v407_v23, %v213_v32 }
  0xb0   :  { %v235_v35 = vadd.f32 %v397_v33, %v229_v34 }
  0xb2   :  { %238 = vadd.xlane.f32.xlu0 %v235_v35 }
 0x11d   :  { %v237_v43 = vpop.xlane.xlu0 %236 }
 0x11e   :  { %v247_v44 = vmul.f32 %v246_v42, %v237_v43 }
 0x120   :  { %v249_v45 = vsub.f32 %v234_v29, %v247_v44 }
 0x122   :  { %v251_v46 = vmul.f32 %v249_v45, %v249_v45 }
 0x124   :  { %253 = vadd.xlane.f32.xlu1 %v251_v46 }
 0x125   :  { %v239_v47 = vpop.xlane.xlu0 %238 }
 0x126   :  { %v248_v48 = vmul.f32 %v246_v42, %v239_v47 }
 0x128   :  { %v250_v49 = vsub.f32 %v235_v35, %v248_v48 }
 0x12a   :  { %v252_v50 = vmul.f32 %v250_v49, %v250_v49 }
 0x12c   :  { %255 = vadd.xlane.f32.xlu1 %v252_v50 }
 0x197   :  { %v254_v51 = vpop.xlane.xlu1 %253 }
 0x198   :  { %v257_v52 = vmul.f32 %v254_v51, %v246_v42 }
 0x19a   :  { %v259_v53 = vadd.f32 1e-12, %v257_v52 }
 0x19c   :  { %412 = vrsqrt.f32 %v259_v53  ;;  %vm267_vm2 = vweird.f32 %v259_v53 }
 0x19f   :  { %v256_v54 = vpop.xlane.xlu1 %255 }
 0x1a0   :  { %v258_v55 = vmul.f32 %v256_v54, %v246_v42 }
 0x1a2   :  { %v413_v56 = vpop.eup %412  ;;  %v260_v57 = vadd.f32 1e-12, %v258_v55 }
 0x1a3   :  { %v262_v58 = vmul.f32 %v413_v56, %v259_v53  ;;  %vm268_vm1 = vweird.f32 %v413_v56 }
 0x1a4   :  { %414 = vrsqrt.f32 %v260_v57  ;;  %vm269_vm3 = vmor %vm267_vm2, %vm268_vm1  ;;  %vm277_vm5 = vweird.f32 %v260_v57 }
 0x1a5   :  { %v263_v59 = vmul.f32 %v413_v56, %v262_v58 }
 0x1a7   :  { %v264_v60 = vmul.f32 0.5, %v263_v59 }
 0x1a9   :  { %v265_v61 = vsub.f32 1.5, %v264_v60 }
 0x1aa   :  { %v415_v62 = vpop.eup %414 }
 0x1ab   :  { %v266_v63 = vmul.f32 %v413_v56, %v265_v61  ;;  %v272_v0 = vmul.f32 %v415_v62, %v260_v57  ;;  %vm278_vm4 = vweird.f32 %v415_v62 }
 0x1ac   :  { %vm279_vm6 = vmor %vm277_vm5, %vm278_vm4 }
 0x1ad   :  { %v273_v1 = vmul.f32 %v415_v62, %v272_v0  ;;  %v270_v2 = vsel %vm269_vm3, %v413_v56, %v266_v63 }
 0x1ae   :  { %v281_v6 = vmul.f32 %v270_v2, %v249_v45 }
 0x1af   :  { %v274_v3 = vmul.f32 0.5, %v273_v1 }
 0x1b0   :  { %v287_v10 = vmul.f32 %v408_v5, %v281_v6 }
 0x1b1   :  { %v275_v4 = vsub.f32 1.5, %v274_v3 }
 0x1b2   :  { %v293_v13 = vadd.f32 %v409_v9, %v287_v10 }
 0x1b3   :  { %v276_v7 = vmul.f32 %v415_v62, %v275_v4 }
 0x1b5   :  { %v280_v8 = vsel %vm279_vm6, %v415_v62, %v276_v7 }
 0x1b6   :  { %v282_v11 = vmul.f32 %v280_v8, %v250_v49 }
 0x1b8   :  { %v288_v12 = vmul.f32 %v408_v5, %v282_v11 }
 0x1ba   :  { %v294_v14 = vadd.f32 %v409_v9, %v288_v12 }
 0x1bc   :  { %v401_v15 = vpack.c.bf16 %v294_v14, %v293_v13 }
 0x1be   :  { %402 = vst [vmem:[%s517_s6] sm:$0xff] %v401_v15  }
 0x1bf   :  { %303 = vsyncpa [#allocation4], 1 }

// kernel: bert_nn_forward.21
= control target key start
LH: loop header
LB: loop body
LE: loop exit
PB: predicated region body
PF: predicated region fallthrough
CT: control target
= control target key end

     0   :  { %8 = vsyncpa [#allocation4], 0  ;;  %s366_s15 = smov [#allocation3]   ;;  %s367_s17 = smov 128   ;;  %s404_s0 = inlined_call_operand.vmem [shape: bf16[16,128], index: 0, kind: input, shape index: {}]   ;;  %s405_s1 = inlined_call_operand.hbm [shape: bf16[128,256], index: 1, kind: input, shape index: {}]   ;;  %s406_s2 = inlined_call_operand.vmem [shape: f32[1,256], index: 2, kind: input, shape index: {}]   ;;  %s407_s3 = inlined_call_operand.vmem [shape: bf16[16,256], index: 3, kind: output, shape index: {}]  }
   0x1   :  { %s15_s14 = sshll.u32 %s405_s1, 4  ;;  %s17_s16 = sshll.u32 %s366_s15, 4  ;;  %s16_s14 = int_to_ptr.hbm [resolvable:$true] %s15_s14  ;;  %s18_s16 = int_to_ptr.vmem [resolvable:$true] %s17_s16 }
   0x2   :  { %s368_s18 = smov 8  }
   0x3   :  { %23 = dma.hbm_to_vmem [thread:$0]  %s16_s14, 2048, %s18_s16, [#allocation4], %s367_s17, %s367_s17, %s368_s18  }
   0x4   :  { %364 = dma.done.wait [#allocation4], 2048  }
   0x5   :  { %365 = vsyncadd [#allocation4], 4294965248  ;;  %v306_v0 = vld [vmem:[#allocation3 + $0x70] sm:$0xf]  ;;  %v328_v1 = vld [vmem:[#allocation3 + $0x74] sm:$0xf0] }
   0x6   :  { %v327_v2 = vld [vmem:[#allocation3 + $0x74] sm:$0xf]  ;;  %v307_v3 = vor.u32 %v328_v1, %v306_v0  ;;  %v308_v4 = vld [vmem:[#allocation3 + $0x78] sm:$0xf0]  ;;  %v298_v5 = vld [vmem:[#allocation3 + $0x60] sm:$0xf] }
   0x7   :  { %v326_v6 = vld [vmem:[#allocation3 + $0x64] sm:$0xf0]  ;;  %v311_v7 = vor.u32 %v327_v2, %v308_v4  ;;  %v325_v8 = vld [vmem:[#allocation3 + $0x64] sm:$0xf]  ;;  %v300_v9 = vld [vmem:[#allocation3 + $0x68] sm:$0xf0] }
   0x8   :  { %146 = vmatpush.bf16.msra.mxu0 %v307_v3  ;;  %v299_v10 = vor.u32 %v326_v6, %v298_v5  ;;  %v303_v11 = vor.u32 %v325_v8, %v300_v9  ;;  %v290_v12 = vld [vmem:[#allocation3 + $0x50] sm:$0xf]  ;;  %v324_v13 = vld [vmem:[#allocation3 + $0x54] sm:$0xf0]  ;;  %v323_v14 = vld [vmem:[#allocation3 + $0x54] sm:$0xf] }
   0x9   :  { %160 = vmatpush.bf16.msra.mxu1 %v311_v7  ;;  %v292_v15 = vld [vmem:[#allocation3 + $0x58] sm:$0xf0]  ;;  %v291_v16 = vor.u32 %v324_v13, %v290_v12  ;;  %v282_v18 = vld [vmem:[#allocation3 + $0x40] sm:$0xf]  ;;  %v322_v19 = vld [vmem:[#allocation3 + $0x44] sm:$0xf0] }
   0xa   :  { %v295_v17 = vor.u32 %v323_v14, %v292_v15  ;;  %v321_v20 = vld [vmem:[#allocation3 + $0x44] sm:$0xf]  ;;  %v284_v21 = vld [vmem:[#allocation3 + $0x48] sm:$0xf0]  ;;  %v283_v22 = vor.u32 %v322_v19, %v282_v18  ;;  %v274_v24 = vld [vmem:[#allocation3 + $0x30] sm:$0xf] }
   0xb   :  { %v287_v23 = vor.u32 %v321_v20, %v284_v21  ;;  %v320_v25 = vld [vmem:[#allocation3 + $0x34] sm:$0xf0]  ;;  %v319_v26 = vld [vmem:[#allocation3 + $0x34] sm:$0xf]  ;;  %v276_v27 = vld [vmem:[#allocation3 + $0x38] sm:$0xf0] }
   0xc   :  { %147 = vmatpush.bf16.msra.mxu0 %v299_v10  ;;  %v275_v28 = vor.u32 %v320_v25, %v274_v24  ;;  %v279_v29 = vor.u32 %v319_v26, %v276_v27  ;;  %v266_v30 = vld [vmem:[#allocation3 + $0x20] sm:$0xf]  ;;  %v318_v31 = vld [vmem:[#allocation3 + $0x24] sm:$0xf0]  ;;  %v317_v32 = vld [vmem:[#allocation3 + $0x24] sm:$0xf] }
   0xd   :  { %161 = vmatpush.bf16.msra.mxu1 %v303_v11  ;;  %v268_v33 = vld [vmem:[#allocation3 + $0x28] sm:$0xf0]  ;;  %v267_v34 = vor.u32 %v318_v31, %v266_v30  ;;  %v258_v36 = vld [vmem:[#allocation3 + $0x10] sm:$0xf]  ;;  %v316_v37 = vld [vmem:[#allocation3 + $0x14] sm:$0xf0] }
   0xe   :  { %v271_v35 = vor.u32 %v317_v32, %v268_v33  ;;  %v315_v38 = vld [vmem:[#allocation3 + $0x14] sm:$0xf]  ;;  %v260_v39 = vld [vmem:[#allocation3 + $0x18] sm:$0xf0]  ;;  %v259_v40 = vor.u32 %v316_v37, %v258_v36  ;;  %v250_v42 = vld [vmem:[#allocation3] sm:$0xf] }
   0xf   :  { %v263_v41 = vor.u32 %v315_v38, %v260_v39  ;;  %v314_v43 = vld [vmem:[#allocation3 + $0x4] sm:$0xf0]  ;;  %v313_v44 = vld [vmem:[#allocation3 + $0x4] sm:$0xf]  ;;  %v252_v45 = vld [vmem:[#allocation3 + $0x8] sm:$0xf0] }
  0x10   :  { %148 = vmatpush.bf16.msra.mxu0 %v291_v16  ;;  %v251_v46 = vor.u32 %v314_v43, %v250_v42  ;;  %v255_v47 = vor.u32 %v313_v44, %v252_v45  ;;  %v312_v48 = vld [vmem:[%s404_s0] sm:$0xff] }
  0x11   :  { %162 = vmatpush.bf16.msra.mxu1 %v295_v17  ;;  %v189_v49 = vld [vmem:[%s406_s2] sm:$0x3] }
  0x12   :  { %v191_v50 = vperm.slane %v189_v49, 0  ;;  %v192_v51 = vperm.slane %v189_v49, 1 }
  0x14   :  { %149 = vmatpush.bf16.msra.mxu0 %v283_v22 }
  0x15   :  { %163 = vmatpush.bf16.msra.mxu1 %v287_v23 }
  0x18   :  { %150 = vmatpush.bf16.msra.mxu0 %v275_v28 }
  0x19   :  { %164 = vmatpush.bf16.msra.mxu1 %v279_v29 }
  0x1c   :  { %151 = vmatpush.bf16.msra.mxu0 %v267_v34 }
  0x1d   :  { %165 = vmatpush.bf16.msra.mxu1 %v271_v35 }
  0x20   :  { %152 = vmatpush.bf16.msra.mxu0 %v259_v40 }
  0x21   :  { %166 = vmatpush.bf16.msra.mxu1 %v263_v41 }
  0x24   :  { %153 = vmatpush.bf16.msra.mxu0 %v251_v46 }
  0x25   :  { %167 = vmatpush.bf16.msra.mxu1 %v255_v47 }
  0x27   :  { %154 = vmatmul.bf16.vlgmr.msra.gmra.mxu0 %v312_v48 }
  0x28   :  { %168 = vmatmul.bf16.vlgmr.msra.gmra.mxu1 %v312_v48 }
  0xa4   :  { %v155_v52 = vpop.f32.mrf.mxu0 }
  0xa5   :  { %v195_v53 = vadd.f32 %v191_v50, %v155_v52  ;;  %v169_v54 = vpop.f32.mrf.mxu1 }
  0xa6   :  { %v196_v55 = vadd.f32 %v192_v51, %v169_v54 }
  0xa7   :  { %v203_v56 = vmul.f32 0.044715, %v195_v53  ;;  %v199_v17 = vmul.f32 0.5, %v195_v53 }
  0xa8   :  { %v204_v57 = vmul.f32 0.044715, %v196_v55  ;;  %v200_v20 = vmul.f32 0.5, %v196_v55 }
  0xa9   :  { %v207_v58 = vmul.f32 %v203_v56, %v195_v53 }
  0xaa   :  { %v208_v59 = vmul.f32 %v204_v57, %v196_v55 }
  0xab   :  { %v211_v60 = vmul.f32 %v207_v58, %v195_v53 }
  0xac   :  { %v212_v61 = vmul.f32 %v208_v59, %v196_v55  ;;  %v157_v62 = vpop.f32.mrf.mxu0 }
  0xad   :  { %v215_v63 = vadd.f32 %v211_v60, %v195_v53  ;;  %v197_v0 = vadd.f32 %v191_v50, %v157_v62  ;;  %v171_v1 = vpop.f32.mrf.mxu1 }
  0xae   :  { %v216_v2 = vadd.f32 %v212_v61, %v196_v55  ;;  %v198_v3 = vadd.f32 %v192_v51, %v171_v1 }
  0xaf   :  { %v219_v4 = vmul.f32 0.7978846, %v215_v63  ;;  %v205_v5 = vmul.f32 0.044715, %v197_v0  ;;  %v201_v27 = vmul.f32 0.5, %v197_v0 }
  0xb0   :  { %v220_v6 = vmul.f32 0.7978846, %v216_v2  ;;  %v206_v7 = vmul.f32 0.044715, %v198_v3  ;;  %v202_v29 = vmul.f32 0.5, %v198_v3 }
  0xb1   :  { %332 = vtanh.f32 %v219_v4  ;;  %v209_v8 = vmul.f32 %v205_v5, %v197_v0 }
  0xb2   :  { %334 = vtanh.f32 %v220_v6  ;;  %v210_v9 = vmul.f32 %v206_v7, %v198_v3 }
  0xb3   :  { %v213_v10 = vmul.f32 %v209_v8, %v197_v0 }
  0xb4   :  { %v214_v11 = vmul.f32 %v210_v9, %v198_v3 }
  0xb5   :  { %v217_v12 = vadd.f32 %v213_v10, %v197_v0 }
  0xb6   :  { %v218_v13 = vadd.f32 %v214_v11, %v198_v3 }
  0xb7   :  { %v333_v14 = vpop.eup %332  ;;  %v221_v15 = vmul.f32 0.7978846, %v217_v12 }
  0xb8   :  { %v335_v16 = vpop.eup %334  ;;  %v227_v18 = vadd.f32 1.0, %v333_v14  ;;  %v222_v19 = vmul.f32 0.7978846, %v218_v13 }
  0xb9   :  { %v228_v21 = vadd.f32 1.0, %v335_v16  ;;  %336 = vtanh.f32 %v221_v15 }
  0xba   :  { %v231_v22 = vmul.f32 %v227_v18, %v199_v17  ;;  %338 = vtanh.f32 %v222_v19 }
  0xbb   :  { %v232_v23 = vmul.f32 %v228_v21, %v200_v20 }
  0xbd   :  { %v235_v24 = vpack.c.bf16 %v232_v23, %v231_v22 }
  0xbf   :  { %v337_v25 = vpop.eup %336  ;;  %237 = vst [vmem:[%s407_s3] sm:$0xff] %v235_v24 }
  0xc0   :  { %v339_v26 = vpop.eup %338  ;;  %v229_v28 = vadd.f32 1.0, %v337_v25 }
  0xc1   :  { %v230_v30 = vadd.f32 1.0, %v339_v26 }
  0xc2   :  { %v233_v31 = vmul.f32 %v229_v28, %v201_v27 }
  0xc3   :  { %v234_v32 = vmul.f32 %v230_v30, %v202_v29 }
  0xc5   :  { %v236_v33 = vpack.c.bf16 %v234_v32, %v233_v31 }
  0xc7   :  { %238 = vst [vmem:[%s407_s3 + $0x8] sm:$0xff] %v236_v33 }
  0xc8   :  { %243 = vsyncpa [#allocation4], 1 }

</bundles_post_ra>
